<compile_context>
chip_gen: v7x
topology: tpu7x:2x2x1
jax: 0.10.0
libtpu: 0.0.40
codegen_flags: <defaults>
</compile_context>

<pallas_src>
import functools
import math

import jax
import jax.numpy as jnp
from jax.experimental import pallas as pl
from jax.experimental.pallas import tpu as pltpu


def _round_up(x, m):
    return (x + m - 1) // m * m


def _tcn_res_kernel(x_ref, w_ref, shift_ref, o_ref, *,
                    n_taps, v_p, t_tile, folded):
    """One (sample, time-tile) grid step.

    x_ref:     (1, (T_pad+K-1)*V_p, Cin)   bf16  whole halo'd sample (resident)
    w_ref:     folded  : (K*Cin, Cout_p)   bf16  BN-scale + residual folded
               unfolded: (K, Cin, Cout_p)  bf16
    shift_ref: (1, Cout_p)                 f32   folded conv-bias + BN shift
    o_ref:     (1, t_tile*V_p, Cout_p)
    """
    rows = t_tile * v_p
    j = pl.program_id(1)

    def tap(k):
        # Start offset is a multiple of V_p (itself a multiple of 8 sublanes),
        # so every shifted view is a sublane-aligned window, not a copy.
        start = pl.multiple_of((j * t_tile + k) * v_p, 8)
        return x_ref[0, pl.ds(start, rows), :]

    if folded:
        # Single K*Cin-deep contraction: the MXU accumulates internally, so
        # there is no per-tap VMEM accumulator traffic at all.
        x_cat = jnp.concatenate([tap(k) for k in range(n_taps)], axis=-1)
        acc = jnp.dot(x_cat, w_ref[...], preferred_element_type=jnp.float32)
    else:
        # Fallback: per-tap dots, paired before accumulation, carried as a
        # traced value (no scratch ref, one output store at the end).
        acc = None
        for k0 in range(0, n_taps, 2):
            p = jnp.dot(tap(k0), w_ref[k0], preferred_element_type=jnp.float32)
            if k0 + 1 < n_taps:
                p = p + jnp.dot(tap(k0 + 1), w_ref[k0 + 1],
                                preferred_element_type=jnp.float32)
            acc = p if acc is None else acc + p

    y = acc + shift_ref[...]
    o_ref[0] = jnp.maximum(y, 0.0).astype(o_ref.dtype)


def tcn_res_unit_ntvc(x, w, b, gamma, beta, run_mean, run_var, *,
                      kernel_size=9, eps=1e-5, row_tile_target=1024,
                      out_dtype=jnp.float32):
    """Fused TCNResUnit forward, channels-last.

    x: (N, T, V, Cin).  w: (Cout, Cin, K, 1) conv weight.  Eval-mode BN,
    identity residual (requires Cin == Cout, stride 1).  Returns
    (N, T, V, Cout) in out_dtype (pass bf16 if the downstream net is bf16 to
    halve the output HBM write).
    """
    n, t, v, c_in = x.shape
    c_out = w.shape[0]
    ksz = kernel_size
    hpad = (ksz - 1) // 2
    assert c_in == c_out, "identity residual path requires in_ch == out_ch"

    # ---- padding / tiling geometry ----------------------------------------
    v_p = _round_up(v, 8)                       # sublane-aligned tap offsets
    # lane-dense output channels; 256-aligned for the 2x256x256 v6e/v7x MXU
    cout_p = _round_up(c_out, 256) if c_out > 128 else _round_up(c_out, 128)
    t_tile = max(1, min(t, row_tile_target // v_p))
    t_pad = _round_up(t, t_tile)
    n_jt = t_pad // t_tile
    rows_tile = t_tile * v_p
    rows_halo = (t_pad + ksz - 1) * v_p

    # ---- fold conv bias + eval-mode BN into per-channel scale / shift ------
    scale = gamma / jnp.sqrt(run_var + eps)                          # (Cout,)
    shift = (b - run_mean) * scale + beta                            # (Cout,)
    shift_p = jnp.pad(shift, (0, cout_p - c_out)).reshape(1, cout_p)
    shift_p = shift_p.astype(jnp.float32)

    # ---- weights: (Cout,Cin,K,1)->(K,Cin,Cout); fold scale + residual ------
    w_mat = jnp.transpose(w[..., 0], (2, 1, 0)) * scale[None, None, :]
    w_mat = w_mat.at[hpad].add(jnp.eye(c_in, c_out, dtype=w_mat.dtype))
    w_mat = jnp.pad(w_mat, ((0, 0), (0, 0), (0, cout_p - c_out)))
    w_mat = w_mat.astype(jnp.bfloat16)                        # (K,Cin,Cout_p)

    # ---- activations: halo-pad time, pad V->V_p, flatten rows, bf16 --------
    x_halo = jnp.pad(x.astype(jnp.bfloat16),
                     ((0, 0), (hpad, hpad + (t_pad - t)), (0, v_p - v), (0, 0)))
    x_flat = x_halo.reshape(n, rows_halo, c_in)

    out_bytes = jnp.dtype(out_dtype).itemsize
    bytes_accessed = (x_flat.size * 2 + w_mat.size * 2 + shift_p.size * 4
                      + n * t_pad * v_p * cout_p * out_bytes)
    flops = 2 * n * t_pad * v_p * ksz * c_in * cout_p

    # ---- VMEM budget derived from the actual block sizes -------------------
    x_blk = rows_halo * c_in * 2
    w_blk = ksz * c_in * cout_p * 2
    o_blk = rows_tile * cout_p * out_bytes
    tmp = rows_tile * (ksz * c_in * 2 + cout_p * 4)   # concat slab + f32 acc
    need = 2 * x_blk + 2 * w_blk + 2 * cout_p * 4 + 2 * o_blk + tmp
    try:
        vmem_cap = int(pltpu.get_tpu_info().vmem_capacity_bytes)
    except Exception:
        vmem_cap = 64 * 1024 * 1024
    vmem_limit = int(min(max(2 * need, 32 * 1024 * 1024), int(0.9 * vmem_cap)))

    def run(folded, single_buffer_params):
        if folded:
            w_arg = w_mat.reshape(ksz * c_in, cout_p)
            w_shape = (ksz * c_in, cout_p)
            w_map = lambda i, j: (0, 0)
        else:
            w_arg = w_mat
            w_shape = (ksz, c_in, cout_p)
            w_map = lambda i, j: (0, 0, 0)
        # Weight / shift blocks are grid-invariant -> single buffer saves VMEM.
        param_kw = ({"pipeline_mode": pl.Buffered(1)}
                    if single_buffer_params else {})
        kernel = functools.partial(_tcn_res_kernel, n_taps=ksz, v_p=v_p,
                                   t_tile=t_tile, folded=folded)
        return pl.pallas_call(
            kernel,
            out_shape=jax.ShapeDtypeStruct((n, t_pad * v_p, cout_p), out_dtype),
            grid=(n, n_jt),
            in_specs=[
                # Whole halo'd sample; block index is j-invariant, so it is
                # DMA'd once per sample and stays resident across time tiles.
                pl.BlockSpec((1, rows_halo, c_in), lambda i, j: (i, 0, 0)),
                pl.BlockSpec(w_shape, w_map, **param_kw),
                pl.BlockSpec((1, cout_p), lambda i, j: (0, 0), **param_kw),
            ],
            out_specs=pl.BlockSpec((1, rows_tile, cout_p),
                                   lambda i, j: (i, j, 0)),
            compiler_params=pltpu.CompilerParams(
                dimension_semantics=("parallel", "parallel"),
                vmem_limit_bytes=vmem_limit),
            cost_estimate=pl.CostEstimate(flops=flops, transcendentals=0,
                                          bytes_accessed=bytes_accessed),
        )(x_flat, w_arg, shift_p)

    out, last_err = None, None
    # Preferred: folded K*Cin contraction + single-buffered params.  Fall back
    # if this Mosaic build lacks unaligned lane-concat or Buffered(1).
    for cfg in ((True, True), (True, False), (False, False)):
        try:
            out = run(*cfg)
            break
        except Exception as e:      # pragma: no cover - depends on jax build
            last_err = e
    if out is None:
        raise last_err

    return out.reshape(n, t_pad, v_p, cout_p)[:, :t, :v, :c_out]


def tcn_res_unit(x, w, b, gamma, beta, run_mean, run_var, *,
                 kernel_size=9, eps=1e-5, row_tile_target=1024,
                 out_dtype=jnp.float32):
    """NCHW adapter matching the PyTorch module layout (N, C, T, V).

    NOTE: in a channels-last network call tcn_res_unit_ntvc directly and keep
    activations (N,T,V,C) end-to-end; these two transposes cost ~2 extra HBM
    passes on a memory-bound op.
    """
    y = tcn_res_unit_ntvc(jnp.transpose(x, (0, 2, 3, 1)), w, b, gamma, beta,
                          run_mean, run_var, kernel_size=kernel_size, eps=eps,
                          row_tile_target=row_tile_target, out_dtype=out_dtype)
    return jnp.transpose(y, (0, 3, 1, 2))


if __name__ == "__main__":
    # Small shapes consistent with the module: in_channels == out_channels,
    # stride == 1  ->  residual is the identity path.
    N, C, T, V, K = 2, 4, 16, 16, 9
    key = jax.random.PRNGKey(0)
    k1, k2, k3 = jax.random.split(key, 3)

    x = jax.random.normal(k1, (N, C, T, V), jnp.float32)
    # conv_init-style deterministic init: kaiming-ish weight, small bias
    w = jax.random.normal(k2, (C, C, K, 1), jnp.float32) * math.sqrt(2.0 / (C * K))
    b = jax.random.normal(k3, (C,), jnp.float32) * 0.01
    # bn_init(bn, 1): gamma = 1, beta = 0; running stats at defaults
    gamma = jnp.ones((C,), jnp.float32)
    beta = jnp.zeros((C,), jnp.float32)
    rmean = jnp.zeros((C,), jnp.float32)
    rvar = jnp.ones((C,), jnp.float32)

    # row_tile_target=128 -> two time tiles per sample, exercising the tiling.
    y = jax.block_until_ready(
        tcn_res_unit(x, w, b, gamma, beta, rmean, rvar,
                     kernel_size=K, row_tile_target=128))

    # pure-JAX f32 reference (NCHW conv + eval BN + identity residual + relu)
    pad = (K - 1) // 2
    conv = jax.lax.conv_general_dilated(
        x, w, window_strides=(1, 1), padding=((pad, pad), (0, 0)),
        dimension_numbers=("NCHW", "OIHW", "NCHW"))
    conv = conv + b[None, :, None, None]
    bn = (conv - rmean[None, :, None, None]) / jnp.sqrt(
        rvar[None, :, None, None] + 1e-5) * gamma[None, :, None, None] \
        + beta[None, :, None, None]
    ref = jnp.maximum(bn + x, 0.0)

    assert y.shape == (N, C, T, V) and y.dtype == jnp.float32
    assert bool(jnp.all(jnp.isfinite(y)))
    err = float(jnp.max(jnp.abs(y - ref)))
    # Kernel runs the MXU in bf16 (f32 accumulate); tolerance reflects bf16
    # input quantization of both the conv path and the folded residual.
    assert err < 6e-2, f"max abs error vs reference: {err}"

    print("KERNEL_OK")
</pallas_src>

<mosaic_0001>
module attributes {stable_mosaic.version = 11 : i64} {
  func.func @_tcn_res_kernel(%arg0: i32, %arg1: i32, %arg2: memref<1x384x4xbf16, #tpu.memory_space<vmem>>, %arg3: memref<36x128xbf16, #tpu.memory_space<vmem>>, %arg4: memref<1x128xf32, #tpu.memory_space<vmem>>, %arg5: memref<1x128x128xf32, #tpu.memory_space<vmem>>) attributes {dimension_semantics = [#tpu.dimension_semantics<parallel>, #tpu.dimension_semantics<parallel>], iteration_bounds = array<i64: 2, 2>, scalar_prefetch = 0 : i64, scratch_operands = 0 : i64, tpu.core_type = #tpu.core_type<tc>, window_params = [{transform_indices = @transform_0, window_bounds = array<i64: 1, 384, 4>}, {pipeline_mode = #tpu.pipeline_mode<synchronous>, transform_indices = @transform_1, window_bounds = array<i64: 36, 128>}, {pipeline_mode = #tpu.pipeline_mode<synchronous>, transform_indices = @transform_2, window_bounds = array<i64: 1, 128>}, {transform_indices = @transform_3, window_bounds = array<i64: 1, 128, 128>}]} {
    %c8_i32 = arith.constant 8 : i32
    %0 = arith.muli %arg1, %c8_i32 : i32
    %c0_i32 = arith.constant 0 : i32
    %1 = arith.addi %0, %c0_i32 : i32
    %c16_i32 = arith.constant 16 : i32
    %2 = arith.muli %1, %c16_i32 : i32
    %3 = tpu.assume_multiple %2, 8 : i32
    %c0 = arith.constant 0 : index
    %4 = arith.index_cast %3 : i32 to index
    %c0_0 = arith.constant 0 : index
    %5 = vector.load %arg2[%c0, %4, %c0_0] : memref<1x384x4xbf16, #tpu.memory_space<vmem>>, vector<1x128x4xbf16>
    %6 = vector.shape_cast %5 : vector<1x128x4xbf16> to vector<128x4xbf16>
    %c8_i32_1 = arith.constant 8 : i32
    %7 = arith.muli %arg1, %c8_i32_1 : i32
    %c1_i32 = arith.constant 1 : i32
    %8 = arith.addi %7, %c1_i32 : i32
    %c16_i32_2 = arith.constant 16 : i32
    %9 = arith.muli %8, %c16_i32_2 : i32
    %10 = tpu.assume_multiple %9, 8 : i32
    %c0_3 = arith.constant 0 : index
    %11 = arith.index_cast %10 : i32 to index
    %c0_4 = arith.constant 0 : index
    %12 = vector.load %arg2[%c0_3, %11, %c0_4] : memref<1x384x4xbf16, #tpu.memory_space<vmem>>, vector<1x128x4xbf16>
    %13 = vector.shape_cast %12 : vector<1x128x4xbf16> to vector<128x4xbf16>
    %c8_i32_5 = arith.constant 8 : i32
    %14 = arith.muli %arg1, %c8_i32_5 : i32
    %c2_i32 = arith.constant 2 : i32
    %15 = arith.addi %14, %c2_i32 : i32
    %c16_i32_6 = arith.constant 16 : i32
    %16 = arith.muli %15, %c16_i32_6 : i32
    %17 = tpu.assume_multiple %16, 8 : i32
    %c0_7 = arith.constant 0 : index
    %18 = arith.index_cast %17 : i32 to index
    %c0_8 = arith.constant 0 : index
    %19 = vector.load %arg2[%c0_7, %18, %c0_8] : memref<1x384x4xbf16, #tpu.memory_space<vmem>>, vector<1x128x4xbf16>
    %20 = vector.shape_cast %19 : vector<1x128x4xbf16> to vector<128x4xbf16>
    %c8_i32_9 = arith.constant 8 : i32
    %21 = arith.muli %arg1, %c8_i32_9 : i32
    %c3_i32 = arith.constant 3 : i32
    %22 = arith.addi %21, %c3_i32 : i32
    %c16_i32_10 = arith.constant 16 : i32
    %23 = arith.muli %22, %c16_i32_10 : i32
    %24 = tpu.assume_multiple %23, 8 : i32
    %c0_11 = arith.constant 0 : index
    %25 = arith.index_cast %24 : i32 to index
    %c0_12 = arith.constant 0 : index
    %26 = vector.load %arg2[%c0_11, %25, %c0_12] : memref<1x384x4xbf16, #tpu.memory_space<vmem>>, vector<1x128x4xbf16>
    %27 = vector.shape_cast %26 : vector<1x128x4xbf16> to vector<128x4xbf16>
    %c8_i32_13 = arith.constant 8 : i32
    %28 = arith.muli %arg1, %c8_i32_13 : i32
    %c4_i32 = arith.constant 4 : i32
    %29 = arith.addi %28, %c4_i32 : i32
    %c16_i32_14 = arith.constant 16 : i32
    %30 = arith.muli %29, %c16_i32_14 : i32
    %31 = tpu.assume_multiple %30, 8 : i32
    %c0_15 = arith.constant 0 : index
    %32 = arith.index_cast %31 : i32 to index
    %c0_16 = arith.constant 0 : index
    %33 = vector.load %arg2[%c0_15, %32, %c0_16] : memref<1x384x4xbf16, #tpu.memory_space<vmem>>, vector<1x128x4xbf16>
    %34 = vector.shape_cast %33 : vector<1x128x4xbf16> to vector<128x4xbf16>
    %c8_i32_17 = arith.constant 8 : i32
    %35 = arith.muli %arg1, %c8_i32_17 : i32
    %c5_i32 = arith.constant 5 : i32
    %36 = arith.addi %35, %c5_i32 : i32
    %c16_i32_18 = arith.constant 16 : i32
    %37 = arith.muli %36, %c16_i32_18 : i32
    %38 = tpu.assume_multiple %37, 8 : i32
    %c0_19 = arith.constant 0 : index
    %39 = arith.index_cast %38 : i32 to index
    %c0_20 = arith.constant 0 : index
    %40 = vector.load %arg2[%c0_19, %39, %c0_20] : memref<1x384x4xbf16, #tpu.memory_space<vmem>>, vector<1x128x4xbf16>
    %41 = vector.shape_cast %40 : vector<1x128x4xbf16> to vector<128x4xbf16>
    %c8_i32_21 = arith.constant 8 : i32
    %42 = arith.muli %arg1, %c8_i32_21 : i32
    %c6_i32 = arith.constant 6 : i32
    %43 = arith.addi %42, %c6_i32 : i32
    %c16_i32_22 = arith.constant 16 : i32
    %44 = arith.muli %43, %c16_i32_22 : i32
    %45 = tpu.assume_multiple %44, 8 : i32
    %c0_23 = arith.constant 0 : index
    %46 = arith.index_cast %45 : i32 to index
    %c0_24 = arith.constant 0 : index
    %47 = vector.load %arg2[%c0_23, %46, %c0_24] : memref<1x384x4xbf16, #tpu.memory_space<vmem>>, vector<1x128x4xbf16>
    %48 = vector.shape_cast %47 : vector<1x128x4xbf16> to vector<128x4xbf16>
    %c8_i32_25 = arith.constant 8 : i32
    %49 = arith.muli %arg1, %c8_i32_25 : i32
    %c7_i32 = arith.constant 7 : i32
    %50 = arith.addi %49, %c7_i32 : i32
    %c16_i32_26 = arith.constant 16 : i32
    %51 = arith.muli %50, %c16_i32_26 : i32
    %52 = tpu.assume_multiple %51, 8 : i32
    %c0_27 = arith.constant 0 : index
    %53 = arith.index_cast %52 : i32 to index
    %c0_28 = arith.constant 0 : index
    %54 = vector.load %arg2[%c0_27, %53, %c0_28] : memref<1x384x4xbf16, #tpu.memory_space<vmem>>, vector<1x128x4xbf16>
    %55 = vector.shape_cast %54 : vector<1x128x4xbf16> to vector<128x4xbf16>
    %c8_i32_29 = arith.constant 8 : i32
    %56 = arith.muli %arg1, %c8_i32_29 : i32
    %c8_i32_30 = arith.constant 8 : i32
    %57 = arith.addi %56, %c8_i32_30 : i32
    %c16_i32_31 = arith.constant 16 : i32
    %58 = arith.muli %57, %c16_i32_31 : i32
    %59 = tpu.assume_multiple %58, 8 : i32
    %c0_32 = arith.constant 0 : index
    %60 = arith.index_cast %59 : i32 to index
    %c0_33 = arith.constant 0 : index
    %61 = vector.load %arg2[%c0_32, %60, %c0_33] : memref<1x384x4xbf16, #tpu.memory_space<vmem>>, vector<1x128x4xbf16>
    %62 = vector.shape_cast %61 : vector<1x128x4xbf16> to vector<128x4xbf16>
    %63 = tpu.concatenate %6, %13, %20, %27, %34, %41, %48, %55, %62 in 1 : vector<128x4xbf16>, vector<128x4xbf16>, vector<128x4xbf16>, vector<128x4xbf16>, vector<128x4xbf16>, vector<128x4xbf16>, vector<128x4xbf16>, vector<128x4xbf16>, vector<128x4xbf16> -> vector<128x36xbf16>
    %c0_34 = arith.constant 0 : index
    %c0_35 = arith.constant 0 : index
    %64 = vector.load %arg3[%c0_34, %c0_35] : memref<36x128xbf16, #tpu.memory_space<vmem>>, vector<36x128xbf16>
    %cst = arith.constant dense<0.000000e+00> : vector<128x128xf32>
    %65 = tpu.matmul %63, %64, %cst {dimension_numbers = #tpu.dot_dimension_numbers<[1], [0], [0], [1], [0, 0, 1, 1], [], []>} : vector<128x36xbf16>, vector<36x128xbf16>, vector<128x128xf32> -> vector<128x128xf32>
    %c0_36 = arith.constant 0 : index
    %c0_37 = arith.constant 0 : index
    %66 = vector.load %arg4[%c0_36, %c0_37] : memref<1x128xf32, #tpu.memory_space<vmem>>, vector<1x128xf32>
    %67 = vector.broadcast %66 : vector<1x128xf32> to vector<128x128xf32>
    %68 = arith.addf %65, %67 : vector<128x128xf32>
    %cst_38 = arith.constant 0.000000e+00 : f32
    %69 = vector.broadcast %cst_38 : f32 to vector<128x128xf32>
    %70 = arith.maximumf %68, %69 : vector<128x128xf32>
    %c0_39 = arith.constant 0 : index
    %c0_40 = arith.constant 0 : index
    %c0_41 = arith.constant 0 : index
    %71 = vector.load %arg5[%c0_39, %c0_40, %c0_41] : memref<1x128x128xf32, #tpu.memory_space<vmem>>, vector<1x128x128xf32>
    %72 = vector.shape_cast %71 : vector<1x128x128xf32> to vector<128x128xf32>
    %73 = vector.shape_cast %70 : vector<128x128xf32> to vector<1x128x128xf32>
    tpu.vector_store %arg5[%c0_39, %c0_40, %c0_41], %73 {strides = array<i32>} : memref<1x128x128xf32, #tpu.memory_space<vmem>>, vector<1x128x128xf32>,
    return
  }
  func.func @transform_0(%arg0: i32, %arg1: i32) -> (i32, i32, i32) {
    %c0_i32 = arith.constant 0 : i32
    %c0_i32_0 = arith.constant 0 : i32
    %c0_i32_1 = arith.constant 0 : i32
    return %arg0, %c0_i32, %c0_i32_0 : i32, i32, i32
  }
  func.func @transform_1(%arg0: i32, %arg1: i32) -> (i32, i32) {
    %c0_i32 = arith.constant 0 : i32
    %c0_i32_0 = arith.constant 0 : i32
    %c0_i32_1 = arith.constant 0 : i32
    return %c0_i32, %c0_i32_0 : i32, i32
  }
  func.func @transform_2(%arg0: i32, %arg1: i32) -> (i32, i32) {
    %c0_i32 = arith.constant 0 : i32
    %c0_i32_0 = arith.constant 0 : i32
    %c0_i32_1 = arith.constant 0 : i32
    return %c0_i32, %c0_i32_0 : i32, i32
  }
  func.func @transform_3(%arg0: i32, %arg1: i32) -> (i32, i32, i32) {
    %c0_i32 = arith.constant 0 : i32
    %c0_i32_0 = arith.constant 0 : i32
    return %arg0, %arg1, %c0_i32 : i32, i32, i32
  }
}

module attributes {stable_mosaic.version = 11 : i64} {
  func.func @_tcn_res_kernel(%arg0: i32, %arg1: i32, %arg2: memref<1x384x4xbf16, #tpu.memory_space<vmem>>, %arg3: memref<36x128xbf16, #tpu.memory_space<vmem>>, %arg4: memref<1x128xf32, #tpu.memory_space<vmem>>, %arg5: memref<1x128x128xf32, #tpu.memory_space<vmem>>) attributes {dimension_semantics = [#tpu.dimension_semantics<parallel>, #tpu.dimension_semantics<parallel>], iteration_bounds = array<i64: 2, 2>, scalar_prefetch = 0 : i64, scratch_operands = 0 : i64, tpu.core_type = #tpu.core_type<tc>, window_params = [{transform_indices = @transform_0, window_bounds = array<i64: 1, 384, 4>}, {pipeline_mode = #tpu.pipeline_mode<synchronous>, transform_indices = @transform_1, window_bounds = array<i64: 36, 128>}, {pipeline_mode = #tpu.pipeline_mode<synchronous>, transform_indices = @transform_2, window_bounds = array<i64: 1, 128>}, {transform_indices = @transform_3, window_bounds = array<i64: 1, 128, 128>}]} {
    %c8_i32 = arith.constant 8 : i32
    %0 = arith.muli %arg1, %c8_i32 : i32
    %c0_i32 = arith.constant 0 : i32
    %1 = arith.addi %0, %c0_i32 : i32
    %c16_i32 = arith.constant 16 : i32
    %2 = arith.muli %1, %c16_i32 : i32
    %3 = tpu.assume_multiple %2, 8 : i32
    %c0 = arith.constant 0 : index
    %4 = arith.index_cast %3 : i32 to index
    %c0_0 = arith.constant 0 : index
    %5 = vector.load %arg2[%c0, %4, %c0_0] : memref<1x384x4xbf16, #tpu.memory_space<vmem>>, vector<1x128x4xbf16>
    %6 = vector.shape_cast %5 : vector<1x128x4xbf16> to vector<128x4xbf16>
    %c8_i32_1 = arith.constant 8 : i32
    %7 = arith.muli %arg1, %c8_i32_1 : i32
    %c1_i32 = arith.constant 1 : i32
    %8 = arith.addi %7, %c1_i32 : i32
    %c16_i32_2 = arith.constant 16 : i32
    %9 = arith.muli %8, %c16_i32_2 : i32
    %10 = tpu.assume_multiple %9, 8 : i32
    %c0_3 = arith.constant 0 : index
    %11 = arith.index_cast %10 : i32 to index
    %c0_4 = arith.constant 0 : index
    %12 = vector.load %arg2[%c0_3, %11, %c0_4] : memref<1x384x4xbf16, #tpu.memory_space<vmem>>, vector<1x128x4xbf16>
    %13 = vector.shape_cast %12 : vector<1x128x4xbf16> to vector<128x4xbf16>
    %c8_i32_5 = arith.constant 8 : i32
    %14 = arith.muli %arg1, %c8_i32_5 : i32
    %c2_i32 = arith.constant 2 : i32
    %15 = arith.addi %14, %c2_i32 : i32
    %c16_i32_6 = arith.constant 16 : i32
    %16 = arith.muli %15, %c16_i32_6 : i32
    %17 = tpu.assume_multiple %16, 8 : i32
    %c0_7 = arith.constant 0 : index
    %18 = arith.index_cast %17 : i32 to index
    %c0_8 = arith.constant 0 : index
    %19 = vector.load %arg2[%c0_7, %18, %c0_8] : memref<1x384x4xbf16, #tpu.memory_space<vmem>>, vector<1x128x4xbf16>
    %20 = vector.shape_cast %19 : vector<1x128x4xbf16> to vector<128x4xbf16>
    %c8_i32_9 = arith.constant 8 : i32
    %21 = arith.muli %arg1, %c8_i32_9 : i32
    %c3_i32 = arith.constant 3 : i32
    %22 = arith.addi %21, %c3_i32 : i32
    %c16_i32_10 = arith.constant 16 : i32
    %23 = arith.muli %22, %c16_i32_10 : i32
    %24 = tpu.assume_multiple %23, 8 : i32
    %c0_11 = arith.constant 0 : index
    %25 = arith.index_cast %24 : i32 to index
    %c0_12 = arith.constant 0 : index
    %26 = vector.load %arg2[%c0_11, %25, %c0_12] : memref<1x384x4xbf16, #tpu.memory_space<vmem>>, vector<1x128x4xbf16>
    %27 = vector.shape_cast %26 : vector<1x128x4xbf16> to vector<128x4xbf16>
    %c8_i32_13 = arith.constant 8 : i32
    %28 = arith.muli %arg1, %c8_i32_13 : i32
    %c4_i32 = arith.constant 4 : i32
    %29 = arith.addi %28, %c4_i32 : i32
    %c16_i32_14 = arith.constant 16 : i32
    %30 = arith.muli %29, %c16_i32_14 : i32
    %31 = tpu.assume_multiple %30, 8 : i32
    %c0_15 = arith.constant 0 : index
    %32 = arith.index_cast %31 : i32 to index
    %c0_16 = arith.constant 0 : index
    %33 = vector.load %arg2[%c0_15, %32, %c0_16] : memref<1x384x4xbf16, #tpu.memory_space<vmem>>, vector<1x128x4xbf16>
    %34 = vector.shape_cast %33 : vector<1x128x4xbf16> to vector<128x4xbf16>
    %c8_i32_17 = arith.constant 8 : i32
    %35 = arith.muli %arg1, %c8_i32_17 : i32
    %c5_i32 = arith.constant 5 : i32
    %36 = arith.addi %35, %c5_i32 : i32
    %c16_i32_18 = arith.constant 16 : i32
    %37 = arith.muli %36, %c16_i32_18 : i32
    %38 = tpu.assume_multiple %37, 8 : i32
    %c0_19 = arith.constant 0 : index
    %39 = arith.index_cast %38 : i32 to index
    %c0_20 = arith.constant 0 : index
    %40 = vector.load %arg2[%c0_19, %39, %c0_20] : memref<1x384x4xbf16, #tpu.memory_space<vmem>>, vector<1x128x4xbf16>
    %41 = vector.shape_cast %40 : vector<1x128x4xbf16> to vector<128x4xbf16>
    %c8_i32_21 = arith.constant 8 : i32
    %42 = arith.muli %arg1, %c8_i32_21 : i32
    %c6_i32 = arith.constant 6 : i32
    %43 = arith.addi %42, %c6_i32 : i32
    %c16_i32_22 = arith.constant 16 : i32
    %44 = arith.muli %43, %c16_i32_22 : i32
    %45 = tpu.assume_multiple %44, 8 : i32
    %c0_23 = arith.constant 0 : index
    %46 = arith.index_cast %45 : i32 to index
    %c0_24 = arith.constant 0 : index
    %47 = vector.load %arg2[%c0_23, %46, %c0_24] : memref<1x384x4xbf16, #tpu.memory_space<vmem>>, vector<1x128x4xbf16>
    %48 = vector.shape_cast %47 : vector<1x128x4xbf16> to vector<128x4xbf16>
    %c8_i32_25 = arith.constant 8 : i32
    %49 = arith.muli %arg1, %c8_i32_25 : i32
    %c7_i32 = arith.constant 7 : i32
    %50 = arith.addi %49, %c7_i32 : i32
    %c16_i32_26 = arith.constant 16 : i32
    %51 = arith.muli %50, %c16_i32_26 : i32
    %52 = tpu.assume_multiple %51, 8 : i32
    %c0_27 = arith.constant 0 : index
    %53 = arith.index_cast %52 : i32 to index
    %c0_28 = arith.constant 0 : index
    %54 = vector.load %arg2[%c0_27, %53, %c0_28] : memref<1x384x4xbf16, #tpu.memory_space<vmem>>, vector<1x128x4xbf16>
    %55 = vector.shape_cast %54 : vector<1x128x4xbf16> to vector<128x4xbf16>
    %c8_i32_29 = arith.constant 8 : i32
    %56 = arith.muli %arg1, %c8_i32_29 : i32
    %c8_i32_30 = arith.constant 8 : i32
    %57 = arith.addi %56, %c8_i32_30 : i32
    %c16_i32_31 = arith.constant 16 : i32
    %58 = arith.muli %57, %c16_i32_31 : i32
    %59 = tpu.assume_multiple %58, 8 : i32
    %c0_32 = arith.constant 0 : index
    %60 = arith.index_cast %59 : i32 to index
    %c0_33 = arith.constant 0 : index
    %61 = vector.load %arg2[%c0_32, %60, %c0_33] : memref<1x384x4xbf16, #tpu.memory_space<vmem>>, vector<1x128x4xbf16>
    %62 = vector.shape_cast %61 : vector<1x128x4xbf16> to vector<128x4xbf16>
    %63 = tpu.concatenate %6, %13, %20, %27, %34, %41, %48, %55, %62 in 1 : vector<128x4xbf16>, vector<128x4xbf16>, vector<128x4xbf16>, vector<128x4xbf16>, vector<128x4xbf16>, vector<128x4xbf16>, vector<128x4xbf16>, vector<128x4xbf16>, vector<128x4xbf16> -> vector<128x36xbf16>
    %c0_34 = arith.constant 0 : index
    %c0_35 = arith.constant 0 : index
    %64 = vector.load %arg3[%c0_34, %c0_35] : memref<36x128xbf16, #tpu.memory_space<vmem>>, vector<36x128xbf16>
    %cst = arith.constant dense<0.000000e+00> : vector<128x128xf32>
    %65 = tpu.matmul %63, %64, %cst {dimension_numbers = #tpu.dot_dimension_numbers<[1], [0], [0], [1], [0, 0, 1, 1], [], []>} : vector<128x36xbf16>, vector<36x128xbf16>, vector<128x128xf32> -> vector<128x128xf32>
    %c0_36 = arith.constant 0 : index
    %c0_37 = arith.constant 0 : index
    %66 = vector.load %arg4[%c0_36, %c0_37] : memref<1x128xf32, #tpu.memory_space<vmem>>, vector<1x128xf32>
    %67 = vector.broadcast %66 : vector<1x128xf32> to vector<128x128xf32>
    %68 = arith.addf %65, %67 : vector<128x128xf32>
    %cst_38 = arith.constant 0.000000e+00 : f32
    %69 = vector.broadcast %cst_38 : f32 to vector<128x128xf32>
    %70 = arith.maximumf %68, %69 : vector<128x128xf32>
    %c0_39 = arith.constant 0 : index
    %c0_40 = arith.constant 0 : index
    %c0_41 = arith.constant 0 : index
    %71 = vector.load %arg5[%c0_39, %c0_40, %c0_41] : memref<1x128x128xf32, #tpu.memory_space<vmem>>, vector<1x128x128xf32>
    %72 = vector.shape_cast %71 : vector<1x128x128xf32> to vector<128x128xf32>
    %73 = vector.shape_cast %70 : vector<128x128xf32> to vector<1x128x128xf32>
    tpu.vector_store %arg5[%c0_39, %c0_40, %c0_41], %73 {strides = array<i32>} : memref<1x128x128xf32, #tpu.memory_space<vmem>>, vector<1x128x128xf32>,
    return
  }
  func.func @transform_0(%arg0: i32, %arg1: i32) -> (i32, i32, i32) {
    %c0_i32 = arith.constant 0 : i32
    %c0_i32_0 = arith.constant 0 : i32
    %c0_i32_1 = arith.constant 0 : i32
    return %arg0, %c0_i32, %c0_i32_0 : i32, i32, i32
  }
  func.func @transform_1(%arg0: i32, %arg1: i32) -> (i32, i32) {
    %c0_i32 = arith.constant 0 : i32
    %c0_i32_0 = arith.constant 0 : i32
    %c0_i32_1 = arith.constant 0 : i32
    return %c0_i32, %c0_i32_0 : i32, i32
  }
  func.func @transform_2(%arg0: i32, %arg1: i32) -> (i32, i32) {
    %c0_i32 = arith.constant 0 : i32
    %c0_i32_0 = arith.constant 0 : i32
    %c0_i32_1 = arith.constant 0 : i32
    return %c0_i32, %c0_i32_0 : i32, i32
  }
  func.func @transform_3(%arg0: i32, %arg1: i32) -> (i32, i32, i32) {
    %c0_i32 = arith.constant 0 : i32
    %c0_i32_0 = arith.constant 0 : i32
    return %arg0, %arg1, %c0_i32 : i32, i32, i32
  }
}

module attributes {stable_mosaic.version = 11 : i64} {
  func.func @_tcn_res_kernel(%arg0: i32, %arg1: i32, %arg2: memref<1x384x4xbf16, #tpu.memory_space<vmem>>, %arg3: memref<9x4x128xbf16, #tpu.memory_space<vmem>>, %arg4: memref<1x128xf32, #tpu.memory_space<vmem>>, %arg5: memref<1x128x128xf32, #tpu.memory_space<vmem>>) attributes {dimension_semantics = [#tpu.dimension_semantics<parallel>, #tpu.dimension_semantics<parallel>], iteration_bounds = array<i64: 2, 2>, scalar_prefetch = 0 : i64, scratch_operands = 0 : i64, tpu.core_type = #tpu.core_type<tc>, window_params = [{transform_indices = @transform_0, window_bounds = array<i64: 1, 384, 4>}, {pipeline_mode = #tpu.pipeline_mode<synchronous>, transform_indices = @transform_1, window_bounds = array<i64: 9, 4, 128>}, {pipeline_mode = #tpu.pipeline_mode<synchronous>, transform_indices = @transform_2, window_bounds = array<i64: 1, 128>}, {transform_indices = @transform_3, window_bounds = array<i64: 1, 128, 128>}]} {
    %c8_i32 = arith.constant 8 : i32
    %0 = arith.muli %arg1, %c8_i32 : i32
    %c0_i32 = arith.constant 0 : i32
    %1 = arith.addi %0, %c0_i32 : i32
    %c16_i32 = arith.constant 16 : i32
    %2 = arith.muli %1, %c16_i32 : i32
    %3 = tpu.assume_multiple %2, 8 : i32
    %c0 = arith.constant 0 : index
    %4 = arith.index_cast %3 : i32 to index
    %c0_0 = arith.constant 0 : index
    %5 = vector.load %arg2[%c0, %4, %c0_0] : memref<1x384x4xbf16, #tpu.memory_space<vmem>>, vector<1x128x4xbf16>
    %6 = vector.shape_cast %5 : vector<1x128x4xbf16> to vector<128x4xbf16>
    %c0_1 = arith.constant 0 : index
    %c0_2 = arith.constant 0 : index
    %c0_3 = arith.constant 0 : index
    %7 = vector.load %arg3[%c0_1, %c0_2, %c0_3] : memref<9x4x128xbf16, #tpu.memory_space<vmem>>, vector<1x4x128xbf16>
    %8 = vector.shape_cast %7 : vector<1x4x128xbf16> to vector<4x128xbf16>
    %cst = arith.constant dense<0.000000e+00> : vector<128x128xf32>
    %9 = tpu.matmul %6, %8, %cst {dimension_numbers = #tpu.dot_dimension_numbers<[1], [0], [0], [1], [0, 0, 1, 1], [], []>} : vector<128x4xbf16>, vector<4x128xbf16>, vector<128x128xf32> -> vector<128x128xf32>
    %c8_i32_4 = arith.constant 8 : i32
    %10 = arith.muli %arg1, %c8_i32_4 : i32
    %c1_i32 = arith.constant 1 : i32
    %11 = arith.addi %10, %c1_i32 : i32
    %c16_i32_5 = arith.constant 16 : i32
    %12 = arith.muli %11, %c16_i32_5 : i32
    %13 = tpu.assume_multiple %12, 8 : i32
    %c0_6 = arith.constant 0 : index
    %14 = arith.index_cast %13 : i32 to index
    %c0_7 = arith.constant 0 : index
    %15 = vector.load %arg2[%c0_6, %14, %c0_7] : memref<1x384x4xbf16, #tpu.memory_space<vmem>>, vector<1x128x4xbf16>
    %16 = vector.shape_cast %15 : vector<1x128x4xbf16> to vector<128x4xbf16>
    %c1 = arith.constant 1 : index
    %c0_8 = arith.constant 0 : index
    %c0_9 = arith.constant 0 : index
    %17 = vector.load %arg3[%c1, %c0_8, %c0_9] : memref<9x4x128xbf16, #tpu.memory_space<vmem>>, vector<1x4x128xbf16>
    %18 = vector.shape_cast %17 : vector<1x4x128xbf16> to vector<4x128xbf16>
    %cst_10 = arith.constant dense<0.000000e+00> : vector<128x128xf32>
    %19 = tpu.matmul %16, %18, %cst_10 {dimension_numbers = #tpu.dot_dimension_numbers<[1], [0], [0], [1], [0, 0, 1, 1], [], []>} : vector<128x4xbf16>, vector<4x128xbf16>, vector<128x128xf32> -> vector<128x128xf32>
    %20 = arith.addf %9, %19 : vector<128x128xf32>
    %c8_i32_11 = arith.constant 8 : i32
    %21 = arith.muli %arg1, %c8_i32_11 : i32
    %c2_i32 = arith.constant 2 : i32
    %22 = arith.addi %21, %c2_i32 : i32
    %c16_i32_12 = arith.constant 16 : i32
    %23 = arith.muli %22, %c16_i32_12 : i32
    %24 = tpu.assume_multiple %23, 8 : i32
    %c0_13 = arith.constant 0 : index
    %25 = arith.index_cast %24 : i32 to index
    %c0_14 = arith.constant 0 : index
    %26 = vector.load %arg2[%c0_13, %25, %c0_14] : memref<1x384x4xbf16, #tpu.memory_space<vmem>>, vector<1x128x4xbf16>
    %27 = vector.shape_cast %26 : vector<1x128x4xbf16> to vector<128x4xbf16>
    %c2 = arith.constant 2 : index
    %c0_15 = arith.constant 0 : index
    %c0_16 = arith.constant 0 : index
    %28 = vector.load %arg3[%c2, %c0_15, %c0_16] : memref<9x4x128xbf16, #tpu.memory_space<vmem>>, vector<1x4x128xbf16>
    %29 = vector.shape_cast %28 : vector<1x4x128xbf16> to vector<4x128xbf16>
    %cst_17 = arith.constant dense<0.000000e+00> : vector<128x128xf32>
    %30 = tpu.matmul %27, %29, %cst_17 {dimension_numbers = #tpu.dot_dimension_numbers<[1], [0], [0], [1], [0, 0, 1, 1], [], []>} : vector<128x4xbf16>, vector<4x128xbf16>, vector<128x128xf32> -> vector<128x128xf32>
    %c8_i32_18 = arith.constant 8 : i32
    %31 = arith.muli %arg1, %c8_i32_18 : i32
    %c3_i32 = arith.constant 3 : i32
    %32 = arith.addi %31, %c3_i32 : i32
    %c16_i32_19 = arith.constant 16 : i32
    %33 = arith.muli %32, %c16_i32_19 : i32
    %34 = tpu.assume_multiple %33, 8 : i32
    %c0_20 = arith.constant 0 : index
    %35 = arith.index_cast %34 : i32 to index
    %c0_21 = arith.constant 0 : index
    %36 = vector.load %arg2[%c0_20, %35, %c0_21] : memref<1x384x4xbf16, #tpu.memory_space<vmem>>, vector<1x128x4xbf16>
    %37 = vector.shape_cast %36 : vector<1x128x4xbf16> to vector<128x4xbf16>
    %c3 = arith.constant 3 : index
    %c0_22 = arith.constant 0 : index
    %c0_23 = arith.constant 0 : index
    %38 = vector.load %arg3[%c3, %c0_22, %c0_23] : memref<9x4x128xbf16, #tpu.memory_space<vmem>>, vector<1x4x128xbf16>
    %39 = vector.shape_cast %38 : vector<1x4x128xbf16> to vector<4x128xbf16>
    %cst_24 = arith.constant dense<0.000000e+00> : vector<128x128xf32>
    %40 = tpu.matmul %37, %39, %cst_24 {dimension_numbers = #tpu.dot_dimension_numbers<[1], [0], [0], [1], [0, 0, 1, 1], [], []>} : vector<128x4xbf16>, vector<4x128xbf16>, vector<128x128xf32> -> vector<128x128xf32>
    %41 = arith.addf %30, %40 : vector<128x128xf32>
    %42 = arith.addf %20, %41 : vector<128x128xf32>
    %c8_i32_25 = arith.constant 8 : i32
    %43 = arith.muli %arg1, %c8_i32_25 : i32
    %c4_i32 = arith.constant 4 : i32
    %44 = arith.addi %43, %c4_i32 : i32
    %c16_i32_26 = arith.constant 16 : i32
    %45 = arith.muli %44, %c16_i32_26 : i32
    %46 = tpu.assume_multiple %45, 8 : i32
    %c0_27 = arith.constant 0 : index
    %47 = arith.index_cast %46 : i32 to index
    %c0_28 = arith.constant 0 : index
    %48 = vector.load %arg2[%c0_27, %47, %c0_28] : memref<1x384x4xbf16, #tpu.memory_space<vmem>>, vector<1x128x4xbf16>
    %49 = vector.shape_cast %48 : vector<1x128x4xbf16> to vector<128x4xbf16>
    %c4 = arith.constant 4 : index
    %c0_29 = arith.constant 0 : index
    %c0_30 = arith.constant 0 : index
    %50 = vector.load %arg3[%c4, %c0_29, %c0_30] : memref<9x4x128xbf16, #tpu.memory_space<vmem>>, vector<1x4x128xbf16>
    %51 = vector.shape_cast %50 : vector<1x4x128xbf16> to vector<4x128xbf16>
    %cst_31 = arith.constant dense<0.000000e+00> : vector<128x128xf32>
    %52 = tpu.matmul %49, %51, %cst_31 {dimension_numbers = #tpu.dot_dimension_numbers<[1], [0], [0], [1], [0, 0, 1, 1], [], []>} : vector<128x4xbf16>, vector<4x128xbf16>, vector<128x128xf32> -> vector<128x128xf32>
    %c8_i32_32 = arith.constant 8 : i32
    %53 = arith.muli %arg1, %c8_i32_32 : i32
    %c5_i32 = arith.constant 5 : i32
    %54 = arith.addi %53, %c5_i32 : i32
    %c16_i32_33 = arith.constant 16 : i32
    %55 = arith.muli %54, %c16_i32_33 : i32
    %56 = tpu.assume_multiple %55, 8 : i32
    %c0_34 = arith.constant 0 : index
    %57 = arith.index_cast %56 : i32 to index
    %c0_35 = arith.constant 0 : index
    %58 = vector.load %arg2[%c0_34, %57, %c0_35] : memref<1x384x4xbf16, #tpu.memory_space<vmem>>, vector<1x128x4xbf16>
    %59 = vector.shape_cast %58 : vector<1x128x4xbf16> to vector<128x4xbf16>
    %c5 = arith.constant 5 : index
    %c0_36 = arith.constant 0 : index
    %c0_37 = arith.constant 0 : index
    %60 = vector.load %arg3[%c5, %c0_36, %c0_37] : memref<9x4x128xbf16, #tpu.memory_space<vmem>>, vector<1x4x128xbf16>
    %61 = vector.shape_cast %60 : vector<1x4x128xbf16> to vector<4x128xbf16>
    %cst_38 = arith.constant dense<0.000000e+00> : vector<128x128xf32>
    %62 = tpu.matmul %59, %61, %cst_38 {dimension_numbers = #tpu.dot_dimension_numbers<[1], [0], [0], [1], [0, 0, 1, 1], [], []>} : vector<128x4xbf16>, vector<4x128xbf16>, vector<128x128xf32> -> vector<128x128xf32>
    %63 = arith.addf %52, %62 : vector<128x128xf32>
    %64 = arith.addf %42, %63 : vector<128x128xf32>
    %c8_i32_39 = arith.constant 8 : i32
    %65 = arith.muli %arg1, %c8_i32_39 : i32
    %c6_i32 = arith.constant 6 : i32
    %66 = arith.addi %65, %c6_i32 : i32
    %c16_i32_40 = arith.constant 16 : i32
    %67 = arith.muli %66, %c16_i32_40 : i32
    %68 = tpu.assume_multiple %67, 8 : i32
    %c0_41 = arith.constant 0 : index
    %69 = arith.index_cast %68 : i32 to index
    %c0_42 = arith.constant 0 : index
    %70 = vector.load %arg2[%c0_41, %69, %c0_42] : memref<1x384x4xbf16, #tpu.memory_space<vmem>>, vector<1x128x4xbf16>
    %71 = vector.shape_cast %70 : vector<1x128x4xbf16> to vector<128x4xbf16>
    %c6 = arith.constant 6 : index
    %c0_43 = arith.constant 0 : index
    %c0_44 = arith.constant 0 : index
    %72 = vector.load %arg3[%c6, %c0_43, %c0_44] : memref<9x4x128xbf16, #tpu.memory_space<vmem>>, vector<1x4x128xbf16>
    %73 = vector.shape_cast %72 : vector<1x4x128xbf16> to vector<4x128xbf16>
    %cst_45 = arith.constant dense<0.000000e+00> : vector<128x128xf32>
    %74 = tpu.matmul %71, %73, %cst_45 {dimension_numbers = #tpu.dot_dimension_numbers<[1], [0], [0], [1], [0, 0, 1, 1], [], []>} : vector<128x4xbf16>, vector<4x128xbf16>, vector<128x128xf32> -> vector<128x128xf32>
    %c8_i32_46 = arith.constant 8 : i32
    %75 = arith.muli %arg1, %c8_i32_46 : i32
    %c7_i32 = arith.constant 7 : i32
    %76 = arith.addi %75, %c7_i32 : i32
    %c16_i32_47 = arith.constant 16 : i32
    %77 = arith.muli %76, %c16_i32_47 : i32
    %78 = tpu.assume_multiple %77, 8 : i32
    %c0_48 = arith.constant 0 : index
    %79 = arith.index_cast %78 : i32 to index
    %c0_49 = arith.constant 0 : index
    %80 = vector.load %arg2[%c0_48, %79, %c0_49] : memref<1x384x4xbf16, #tpu.memory_space<vmem>>, vector<1x128x4xbf16>
    %81 = vector.shape_cast %80 : vector<1x128x4xbf16> to vector<128x4xbf16>
    %c7 = arith.constant 7 : index
    %c0_50 = arith.constant 0 : index
    %c0_51 = arith.constant 0 : index
    %82 = vector.load %arg3[%c7, %c0_50, %c0_51] : memref<9x4x128xbf16, #tpu.memory_space<vmem>>, vector<1x4x128xbf16>
    %83 = vector.shape_cast %82 : vector<1x4x128xbf16> to vector<4x128xbf16>
    %cst_52 = arith.constant dense<0.000000e+00> : vector<128x128xf32>
    %84 = tpu.matmul %81, %83, %cst_52 {dimension_numbers = #tpu.dot_dimension_numbers<[1], [0], [0], [1], [0, 0, 1, 1], [], []>} : vector<128x4xbf16>, vector<4x128xbf16>, vector<128x128xf32> -> vector<128x128xf32>
    %85 = arith.addf %74, %84 : vector<128x128xf32>
    %86 = arith.addf %64, %85 : vector<128x128xf32>
    %c8_i32_53 = arith.constant 8 : i32
    %87 = arith.muli %arg1, %c8_i32_53 : i32
    %c8_i32_54 = arith.constant 8 : i32
    %88 = arith.addi %87, %c8_i32_54 : i32
    %c16_i32_55 = arith.constant 16 : i32
    %89 = arith.muli %88, %c16_i32_55 : i32
    %90 = tpu.assume_multiple %89, 8 : i32
    %c0_56 = arith.constant 0 : index
    %91 = arith.index_cast %90 : i32 to index
    %c0_57 = arith.constant 0 : index
    %92 = vector.load %arg2[%c0_56, %91, %c0_57] : memref<1x384x4xbf16, #tpu.memory_space<vmem>>, vector<1x128x4xbf16>
    %93 = vector.shape_cast %92 : vector<1x128x4xbf16> to vector<128x4xbf16>
    %c8 = arith.constant 8 : index
    %c0_58 = arith.constant 0 : index
    %c0_59 = arith.constant 0 : index
    %94 = vector.load %arg3[%c8, %c0_58, %c0_59] : memref<9x4x128xbf16, #tpu.memory_space<vmem>>, vector<1x4x128xbf16>
    %95 = vector.shape_cast %94 : vector<1x4x128xbf16> to vector<4x128xbf16>
    %cst_60 = arith.constant dense<0.000000e+00> : vector<128x128xf32>
    %96 = tpu.matmul %93, %95, %cst_60 {dimension_numbers = #tpu.dot_dimension_numbers<[1], [0], [0], [1], [0, 0, 1, 1], [], []>} : vector<128x4xbf16>, vector<4x128xbf16>, vector<128x128xf32> -> vector<128x128xf32>
    %97 = arith.addf %86, %96 : vector<128x128xf32>
    %c0_61 = arith.constant 0 : index
    %c0_62 = arith.constant 0 : index
    %98 = vector.load %arg4[%c0_61, %c0_62] : memref<1x128xf32, #tpu.memory_space<vmem>>, vector<1x128xf32>
    %99 = vector.broadcast %98 : vector<1x128xf32> to vector<128x128xf32>
    %100 = arith.addf %97, %99 : vector<128x128xf32>
    %cst_63 = arith.constant 0.000000e+00 : f32
    %101 = vector.broadcast %cst_63 : f32 to vector<128x128xf32>
    %102 = arith.maximumf %100, %101 : vector<128x128xf32>
    %c0_64 = arith.constant 0 : index
    %c0_65 = arith.constant 0 : index
    %c0_66 = arith.constant 0 : index
    %103 = vector.load %arg5[%c0_64, %c0_65, %c0_66] : memref<1x128x128xf32, #tpu.memory_space<vmem>>, vector<1x128x128xf32>
    %104 = vector.shape_cast %103 : vector<1x128x128xf32> to vector<128x128xf32>
    %105 = vector.shape_cast %102 : vector<128x128xf32> to vector<1x128x128xf32>
    tpu.vector_store %arg5[%c0_64, %c0_65, %c0_66], %105 {strides = array<i32>} : memref<1x128x128xf32, #tpu.memory_space<vmem>>, vector<1x128x128xf32>,
    return
  }
  func.func @transform_0(%arg0: i32, %arg1: i32) -> (i32, i32, i32) {
    %c0_i32 = arith.constant 0 : i32
    %c0_i32_0 = arith.constant 0 : i32
    %c0_i32_1 = arith.constant 0 : i32
    return %arg0, %c0_i32, %c0_i32_0 : i32, i32, i32
  }
  func.func @transform_1(%arg0: i32, %arg1: i32) -> (i32, i32, i32) {
    %c0_i32 = arith.constant 0 : i32
    %c0_i32_0 = arith.constant 0 : i32
    %c0_i32_1 = arith.constant 0 : i32
    %c0_i32_2 = arith.constant 0 : i32
    return %c0_i32, %c0_i32_0, %c0_i32_1 : i32, i32, i32
  }
  func.func @transform_2(%arg0: i32, %arg1: i32) -> (i32, i32) {
    %c0_i32 = arith.constant 0 : i32
    %c0_i32_0 = arith.constant 0 : i32
    %c0_i32_1 = arith.constant 0 : i32
    return %c0_i32, %c0_i32_0 : i32, i32
  }
  func.func @transform_3(%arg0: i32, %arg1: i32) -> (i32, i32, i32) {
    %c0_i32 = arith.constant 0 : i32
    %c0_i32_0 = arith.constant 0 : i32
    return %arg0, %arg1, %c0_i32 : i32, i32, i32
  }
}

</mosaic_0001>

<bundles_post_ra>
// kernel: tpu_custom_call.1
= control target key start
LH: loop header
LB: loop body
LE: loop exit
PB: predicated region body
PF: predicated region fallthrough
CT: control target
= control target key end

     0   :  { %s2197_s0 = inlined_call_operand.vmem [shape: bf16[2,384,4], index: 0, kind: input, shape index: {}]   ;;  %s2198_s1 = inlined_call_operand.vmem [shape: bf16[36,128], index: 1, kind: input, shape index: {}]   ;;  %s2199_s2 = inlined_call_operand.vmem [shape: f32[1,128], index: 2, kind: input, shape index: {}]   ;;  %s2200_s3 = inlined_call_operand.hbm [shape: f32[2,256,128], index: 3, kind: output, shape index: {}]  }
   0x1   :  { %2213 = sst [smem:[#allocation7_spill]] %s2197_s0 }
   0x2   :  { %8 = vsyncpa [#allocation3], 0 }
   0x3   :  { %10 = vsyncpa [#allocation3 + $0x1], 0  ;;  %s1765_s12 = smov 0   ;;  %s1767_s13 = smov 0  }
   0x4   :  { %s1769_s14 = smov 0   ;;  %s1771_s15 = smov 0  }
   0x5   :  { %s1773_s16 = smov 0   ;;  %s1775_s17 = smov 0  }
   0x6   :  { %s1777_s18 = smov 0   ;;  %s1779_s19 = smov 0  }
   0x7 LB: > { %s1302_s20 = sadd.s32 4294967295, %s1733_s19   ;;  %s1303_s21 = sadd.s32 4294967294, %s1733_s19   ;;  %s1733_s19 = sphi %s1779_s19, %s16_s19   ;;  %s1729_s18 = sphi %s1777_s18, %s2232_s18   ;;  %s1725_s17 = sphi %s1775_s17, %s2231_s17   ;;  %s1721_s16 = sphi %s1773_s16, %s2230_s16   ;;  %s1717_s15 = sphi %s1771_s15, %s2229_s15   ;;  %s1713_s14 = sphi %s1769_s14, %s2228_s14   ;;  %s1709_s13 = sphi %s1767_s13, %s2227_s13   ;;  %s1705_s12 = sphi %s1765_s12, %s2226_s12  }
   0x8   : > { %s25_s22 = sadd.s32 1, %s1725_s17  ;;  %s28_s23 = sadd.s32 1, %s1729_s18 }
   0x9   : > { %p26_p0 = scmp.ge.s32.totalorder %s25_s22, 2  ;;  %p115_p1 = scmp.ne.s32.totalorder %s1713_s14, %s1709_s13 }
   0xa   : > { %p116_p2 = scmp.eq.s32.totalorder %s1302_s20, 3  ;;  %p121_p5 = scmp.ne.s32.totalorder %s1709_s13, %s1705_s12 }
   0xb   : > { %s2234_s22 = smov (%p26_p0, %s25_s22), 0  ;;  %s2236_s23 = smov (!%p26_p0, %s28_s23), %s1729_s18 }
   0xc   : > { %2214 = sst [smem:[#allocation5_spill]] %s2234_s22  ;;  %s101_s24 = ssub.s32 %s1725_s17, %s2234_s22 }
   0xd   : > { %p1816_p3 = por %p116_p2, %p115_p1  ;;  %p30_p4 = scmp.ge.s32.totalorder %s2236_s23, 2 }
   0xe   : > { %p122_p6 = scmp.eq.s32.totalorder %s1303_s21, 3  ;;  %p1306_p7 = scmp.ge.s32.totalorder %s1733_s19, 1 }
   0xf   : > { %s2238_s23 = smov (%p30_p4, %s2236_s23), 0  ;;  %p154_p9 = scmp.lt.s32.totalorder %s1733_s19, 5 }
  0x10   : > { %2216 = sst [smem:[#allocation6_spill]] %s2238_s23  ;;  %p1825_p8 = por %p122_p6, %p121_p5 }
  0x11   : > { %s100_s27 = ssub.s32 %s1729_s18, %s2238_s23  ;;  %s105_s28 = sadd.s32 1, %s1713_s14 }
  0x12   : > { %s102_s29 = sor.u32 %s101_s24, %s100_s27  ;;  %p155_p10 = pnand %p1306_p7, %p154_p9 }
  0x13   : > { %p103_p11 = scmp.eq.s32.totalorder %s102_s29, 0  ;;  %p178_p12 = scmp.lt.s32.totalorder (!%p155_p10), %s1721_s16, 1  ;;  %v1632_v36 = vld [vmem:[%s2198_s1] sm:$0xff] (!%p155_p10)   ;;  %v1633_v37 = vld [vmem:[%s2198_s1 + $0x8] sm:$0xff] (!%p155_p10)   ;;  %vm1059_vm0 = vcmask (!%p155_p10), 1041408   ;;  %vm871_vm1 = vcmask (!%p155_p10), 31744  }
  0x14   : > { %158 = sbr.rel (%p155_p10) target bundleno = 508 (0x1fc), region = 32  ;;  %s1838_s4 = sshll.u32 (!%p155_p10), %s1717_s15, 7  ;;  %1453 = vmatprep.subr.bf16.mxu0 (!%p155_p10), %v1632_v36  ;;  %1475 = vmatprep.subr.bf16.mxu1 (!%p155_p10), %v1632_v36  ;;  %v1636_v40 = vld [vmem:[%s2198_s1 + $0x10] ss:$0 sps:$4 sm:$0x33] (!%p155_p10)   ;;  %vm896_vm2 = vcmask (!%p155_p10), 64512  }
  0x15   : > { %s1834_s30 = scalar_select %p103_p11, %s1713_s14, %s105_s28  }
  0x16   : > { %s1419_s5 = sadd.s32 (!%p155_p10), 16, %s1838_s4  ;;  %s1421_s8 = sadd.s32 (!%p155_p10), 32, %s1838_s4  ;;  %1454 = vmatpush3.bf16.msra.mxu0 (!%p155_p10), %v1632_v36  ;;  %1478 = vmatpush3.bf16.msra.mxu1 (!%p155_p10), %v1632_v36  ;;  %v1061_v43 = vsel (!%p155_p10), %vm1059_vm0, %v1636_v40, 0  ;;  %vm913_vm3 = vcmask (!%p155_p10), 97280   ;;  %vm930_vm4 = vcmask (!%p155_p10), 130048   ;;  %vm947_vm5 = vcmask (!%p155_p10), 162816  }
  0x17   : > { %s209_s7 = sshra.s32 (!%p155_p10), %s1419_s5, 3  ;;  %s231_s11 = sshra.s32 (!%p155_p10), %s1421_s8, 3  ;;  %1455 = vmatprep.subr.bf16.mxu0 (!%p155_p10), %v1633_v37  ;;  %1476 = vmatprep.subr.bf16.mxu1 (!%p155_p10), %v1633_v37  ;;  %vm964_vm6 = vcmask (!%p155_p10), 195584   ;;  %vm981_vm7 = vcmask (!%p155_p10), 228352   ;;  %vm998_vm8 = vcmask (!%p155_p10), 261120   ;;  %vm1042_vm9 = vcmask (!%p155_p10), 293888  }
  0x18   : > { %s1313_s10 = sshll.u32 (!%p155_p10), %s209_s7, 2  ;;  %s2218_s0 = sld [smem:[#allocation7_spill]] (!%p155_p10) }
  0x19   : > { %s1315_s28 = sshll.u32 (!%p155_p10), %s231_s11, 2  ;;  %s1423_s29 = sadd.s32 (!%p155_p10), 48, %s1838_s4 }
  0x1a   : > { %s253_s5 = sshra.s32 (!%p155_p10), %s1423_s29, 3  ;;  %s1427_s21 = sadd.s32 (!%p155_p10), 80, %s1838_s4  ;;  %1456 = vmatpush3.bf16.msra.mxu0 (!%p155_p10), %v1633_v37  ;;  %1479 = vmatpush3.bf16.msra.mxu1 (!%p155_p10), %v1633_v37 }
  0x1b   : > { %s179_s6 = scalar_select %p178_p12, %s1721_s16, 1  ;;  %1481 = vmatprep.subr.msk.bf16.mxu0 %vm1059_vm0, %v1636_v40  ;;  %1482 = vmatprep.subr.msk.bf16.mxu1 %vm1059_vm0, %v1636_v40 }
  0x1c   : > { %s1317_s8 = sshll.u32 %s253_s5, 2  ;;  %s2204_s29 = smov 8  }
  0x1d   : > { %s1483_s9 = smul.u32 192, %s179_s6  ;;  %s2201_s6 = smov 4  }
  0x1e   : > { %s1737_s23 = smov 12   ;;  %s1738_s22 = smov 16   ;;  %1458 = vmatpush3.bf16.msra.mxu0 %v1061_v43  ;;  %1480 = vmatpush3.bf16.msra.mxu1 %v1061_v43 }
  0x1f   : > { %s1846_s24 = scalar_lea.vmem %s2218_s0, %s1483_s9  ;;  %s1425_s9 = sadd.s32 64, %s1838_s4 }
  0x20   : > { %s1849_s27 = scalar_lea.vmem %s1846_s24, %s1313_s10  ;;  %s1859_s7 = scalar_lea.vmem %s1846_s24, %s1315_s28 }
  0x21   : > { %v1564_v0 = vld [vmem:[%s1849_s27 + $0x8] sm:$0xff]   ;;  %v1565_v1 = vld [vmem:[%s1849_s27] sm:$0xff]   ;;  %s275_s10 = sshra.s32 %s1425_s9, 3  ;;  %s1867_s11 = scalar_lea.vmem %s1846_s24, %s1317_s8  ;;  %v1594_v30 = vld [vmem:[%s1849_s27 + $0x30] sm:$0xff]  }
  0x22   : > { %465 = vrot.lane.b32.xlu1 %v1564_v0, %s2201_s6  ;;  %v1566_v2 = vld [vmem:[%s1849_s27 + $0x28] sm:$0xff]   ;;  %463 = vrot.lane.b32.xlu0 %v1565_v1, %s2201_s6  ;;  %v1567_v3 = vld [vmem:[%s1849_s27 + $0x20] sm:$0xff]   ;;  %s1319_s20 = sshll.u32 %s275_s10, 2  ;;  %s297_s28 = sshra.s32 %s1427_s21, 3 }
  0x23   : > { %v1568_v4 = vld [vmem:[%s1859_s7 + $0x20] sm:$0xff]   ;;  %v1570_v6 = vld [vmem:[%s1859_s7 + $0x28] sm:$0xff]   ;;  %s1875_s5 = scalar_lea.vmem %s1846_s24, %s1319_s20  ;;  %s1321_s8 = sshll.u32 %s297_s28, 2  ;;  %v1595_v31 = vld [vmem:[%s1849_s27 + $0x10] sm:$0xff]  }
  0x24   : > { %v1569_v5 = vld [vmem:[%s1859_s7] sm:$0xff]   ;;  %v1571_v7 = vld [vmem:[%s1859_s7 + $0x8] sm:$0xff]   ;;  %s1429_s9 = sadd.s32 96, %s1838_s4  ;;  %s1883_s10 = scalar_lea.vmem %s1846_s24, %s1321_s8  ;;  %v1598_v34 = vld [vmem:[%s1849_s27 + $0x38] sm:$0xff]  }
  0x25   : > { %v1572_v8 = vld [vmem:[%s1867_s11 + $0x20] sm:$0xff]   ;;  %s1431_s20 = sadd.s32 112, %s1838_s4  ;;  %v1574_v10 = vld [vmem:[%s1867_s11 + $0x28] sm:$0xff]   ;;  %s1433_s8 = sadd.s32 128, %s1838_s4  ;;  %v1599_v35 = vld [vmem:[%s1849_s27 + $0x18] sm:$0xff]  }
  0x26   : > { %473 = vrot.lane.b32.xlu1 %v1566_v2, %s2201_s6  ;;  %471 = vrot.lane.b32.xlu0 %v1567_v3, %s2201_s6  ;;  %s319_s6 = sshra.s32 %s1429_s9, 3  ;;  %v1573_v9 = vld [vmem:[%s1867_s11] sm:$0xff]   ;;  %s341_s0 = sshra.s32 %s1431_s20, 3  ;;  %v1575_v11 = vld [vmem:[%s1867_s11 + $0x8] sm:$0xff]  }
  0x27   : > { %s1323_s21 = sshll.u32 %s319_s6, 2  ;;  %s1325_s9 = sshll.u32 %s341_s0, 2  ;;  %v1576_v12 = vld [vmem:[%s1875_s5 + $0x20] sm:$0xff]   ;;  %v1578_v14 = vld [vmem:[%s1875_s5 + $0x28] sm:$0xff]   ;;  %v1600_v38 = vld [vmem:[%s1859_s7 + $0x30] sm:$0xff]  }
  0x28   : > { %s1891_s28 = scalar_lea.vmem %s1846_s24, %s1323_s21  ;;  %v1577_v13 = vld [vmem:[%s1875_s5] sm:$0xff]   ;;  %s1899_s6 = scalar_lea.vmem %s1846_s24, %s1325_s9  ;;  %v1579_v15 = vld [vmem:[%s1875_s5 + $0x8] sm:$0xff]   ;;  %v1601_v39 = vld [vmem:[%s1859_s7 + $0x10] sm:$0xff]  }
  0x29   : > { %v1580_v16 = vld [vmem:[%s1883_s10 + $0x20] sm:$0xff]   ;;  %v1582_v18 = vld [vmem:[%s1883_s10 + $0x28] sm:$0xff]   ;;  %s2207_s21 = smov 24   ;;  %s2211_s9 = smov 28   ;;  %v1602_v41 = vld [vmem:[%s1859_s7 + $0x38] sm:$0xff]  }
  0x2a   : > { %527 = vrot.lane.b32.xlu1 %v1568_v4, %s2204_s29  ;;  %519 = vrot.lane.b32.xlu0 %v1569_v5, %s2204_s29  ;;  %v1581_v17 = vld [vmem:[%s1883_s10] sm:$0xff]   ;;  %v1583_v19 = vld [vmem:[%s1883_s10 + $0x8] sm:$0xff]  }
  0x2b   : > { %v1584_v20 = vld [vmem:[%s1891_s28 + $0x20] sm:$0xff]   ;;  %v1586_v22 = vld [vmem:[%s1891_s28 + $0x28] sm:$0xff]   ;;  %v1603_v42 = vld [vmem:[%s1859_s7 + $0x18] sm:$0xff]   ;;  %s2221_s7 = smov 20  }
  0x2c   : > { %v1585_v21 = vld [vmem:[%s1891_s28] sm:$0xff]   ;;  %v1587_v23 = vld [vmem:[%s1891_s28 + $0x8] sm:$0xff]   ;;  %v1604_v44 = vld [vmem:[%s1867_s11 + $0x30] sm:$0xff]  }
  0x2d   : > { %v1588_v24 = vld [vmem:[%s1899_s6 + $0x20] sm:$0xff]   ;;  %v1590_v26 = vld [vmem:[%s1899_s6 + $0x28] sm:$0xff]   ;;  %v1605_v45 = vld [vmem:[%s1867_s11 + $0x10] sm:$0xff]  }
  0x2e   : > { %529 = vrot.lane.b32.xlu1 %v1570_v6, %s2204_s29  ;;  %521 = vrot.lane.b32.xlu0 %v1571_v7, %s2204_s29  ;;  %s363_s29 = sshra.s32 %s1433_s8, 3  ;;  %v1589_v25 = vld [vmem:[%s1899_s6] sm:$0xff]   ;;  %v1591_v27 = vld [vmem:[%s1899_s6 + $0x8] sm:$0xff]   ;;  %s186_s8 = sshra.s32 %s1838_s4, 3 }
  0x2f   : > { %s1327_s20 = sshll.u32 %s363_s29, 2  ;;  %s2209_s29 = smov 20   ;;  %v1606_v46 = vld [vmem:[%s1867_s11 + $0x38] sm:$0xff]   ;;  %v1608_v48 = vld [vmem:[%s1875_s5 + $0x30] sm:$0xff]  }
  0x30   : > { %s1906_s0 = scalar_lea.vmem %s1846_s24, %s1327_s20  ;;  %s1310_s20 = sshll.u32 %s186_s8, 2  ;;  %v1607_v47 = vld [vmem:[%s1867_s11 + $0x18] sm:$0xff]   ;;  %v1609_v49 = vld [vmem:[%s1875_s5 + $0x10] sm:$0xff]  }
  0x31   : > { %v1592_v28 = vld [vmem:[%s1906_s0 + $0x20] sm:$0xff]   ;;  %s2219_s4 = smov 4   ;;  %v1596_v32 = vld [vmem:[%s1906_s0 + $0x28] sm:$0xff]   ;;  %v1610_v50 = vld [vmem:[%s1875_s5 + $0x38] sm:$0xff]   ;;  %s175_s11 = sand.u32 1, %s1709_s13  }
  0x32   : > { %583 = vrot.lane.b32.xlu1 %v1572_v8, %s1737_s23  ;;  %575 = vrot.lane.b32.xlu0 %v1573_v9, %s1737_s23  ;;  %v1593_v29 = vld [vmem:[%s1906_s0] sm:$0xff]   ;;  %v1597_v33 = vld [vmem:[%s1906_s0 + $0x8] sm:$0xff]   ;;  %s2144_s27 = scalar_lea.sflag [#allocation3], %s175_s11 }
  0x33   : > { %v1611_v51 = vld [vmem:[%s1875_s5 + $0x18] sm:$0xff]   ;;  %v1612_v52 = vld [vmem:[%s1883_s10 + $0x30] sm:$0xff]  }
  0x34   : > { %v1613_v53 = vld [vmem:[%s1883_s10 + $0x10] sm:$0xff]   ;;  %v1614_v54 = vld [vmem:[%s1883_s10 + $0x38] sm:$0xff]  }
  0x35   : > { %v1615_v55 = vld [vmem:[%s1883_s10 + $0x18] sm:$0xff]   ;;  %v1616_v56 = vld [vmem:[%s1891_s28 + $0x30] sm:$0xff]  }
  0x36   : > { %585 = vrot.lane.b32.xlu1 %v1574_v10, %s1737_s23  ;;  %577 = vrot.lane.b32.xlu0 %v1575_v11, %s1737_s23  ;;  %v1617_v57 = vld [vmem:[%s1891_s28 + $0x10] sm:$0xff]   ;;  %v1618_v58 = vld [vmem:[%s1891_s28 + $0x38] sm:$0xff]  }
  0x37   : > { %v1619_v59 = vld [vmem:[%s1891_s28 + $0x18] sm:$0xff]   ;;  %v1620_v60 = vld [vmem:[%s1899_s6 + $0x30] sm:$0xff]   ;;  %s1307_s28 = sshll.u32 %s175_s11, 7 }
  0x38   : > { %v1621_v61 = vld [vmem:[%s1899_s6 + $0x10] sm:$0xff]   ;;  %v1624_v62 = vld [vmem:[%s1899_s6 + $0x38] sm:$0xff]  }
  0x39   : > { %v1625_v63 = vld [vmem:[%s1899_s6 + $0x18] sm:$0xff]   ;;  %v1628_v2 = vld [vmem:[%s1906_s0 + $0x30] sm:$0xff]   ;;  %s2111_s6 = scalar_lea.vmem [#allocation2], %s1307_s28 }
  0x3a   : > { %639 = vrot.lane.b32.xlu1 %v1576_v12, %s1738_s22  ;;  %631 = vrot.lane.b32.xlu0 %v1577_v13, %s1738_s22  ;;  %v1629_v3 = vld [vmem:[%s1906_s0 + $0x10] sm:$0xff]   ;;  %v1630_v6 = vld [vmem:[%s1906_s0 + $0x38] sm:$0xff]  }
  0x3b   : > { %v1631_v7 = vld [vmem:[%s1906_s0 + $0x18] sm:$0xff]   ;;  %s1413_s0 = sshll.u32 %s1717_s15, 4 }
  0x3e   : > { %641 = vrot.lane.b32.xlu1 %v1578_v14, %s1738_s22  ;;  %633 = vrot.lane.b32.xlu0 %v1579_v15, %s1738_s22 }
  0x42   : > { %695 = vrot.lane.b32.xlu1 %v1580_v16, %s2209_s29  ;;  %687 = vrot.lane.b32.xlu0 %v1581_v17, %s2209_s29 }
  0x46   : > { %697 = vrot.lane.b32.xlu1 %v1582_v18, %s2209_s29  ;;  %689 = vrot.lane.b32.xlu0 %v1583_v19, %s2209_s29  ;;  %s1742_s29 = smov 32  }
  0x4a   : > { %751 = vrot.lane.b32.xlu1 %v1584_v20, %s2207_s21  ;;  %743 = vrot.lane.b32.xlu0 %v1585_v21, %s2207_s21 }
  0x4e   : > { %753 = vrot.lane.b32.xlu1 %v1586_v22, %s2207_s21  ;;  %745 = vrot.lane.b32.xlu0 %v1587_v23, %s2207_s21  ;;  %s1938_s21 = scalar_lea.vmem %s1846_s24, %s1310_s20 }
  0x52   : > { %807 = vrot.lane.b32.xlu1 %v1588_v24, %s2211_s9  ;;  %799 = vrot.lane.b32.xlu0 %v1589_v25, %s2211_s9 }
  0x56   : > { %809 = vrot.lane.b32.xlu1 %v1590_v26, %s2211_s9  ;;  %801 = vrot.lane.b32.xlu0 %v1591_v27, %s2211_s9  ;;  %s2220_s9 = smov 8  }
  0x5a   : > { %863 = vrot.lane.b32.xlu1 %v1592_v28, %s1742_s29  ;;  %855 = vrot.lane.b32.xlu0 %v1593_v29, %s1742_s29  ;;  %v1627_v28 = vld [vmem:[%s1938_s21 + $0x20] sm:$0xff]  }
  0x5b   : > { %v1623_v29 = vld [vmem:[%s1938_s21] sm:$0xff]  }
  0x5e   : > { %475 = vrot.lane.b32.xlu1 %v1594_v30, %s2219_s4  ;;  %467 = vrot.lane.b32.xlu0 %v1595_v31, %s2219_s4 }
  0x62   : > { %865 = vrot.lane.b32.xlu1 %v1596_v32, %s1742_s29  ;;  %857 = vrot.lane.b32.xlu0 %v1597_v33, %s1742_s29 }
  0x66   : > { %477 = vrot.lane.b32.xlu1 %v1598_v34, %s2219_s4  ;;  %469 = vrot.lane.b32.xlu0 %v1599_v35, %s2219_s4 }
  0x6a   : > { %531 = vrot.lane.b32.xlu1 %v1600_v38, %s2220_s9  ;;  %523 = vrot.lane.b32.xlu0 %v1601_v39, %s2220_s9 }
  0x6e   : > { %533 = vrot.lane.b32.xlu1 %v1602_v41, %s2220_s9  ;;  %525 = vrot.lane.b32.xlu0 %v1603_v42, %s2220_s9  ;;  %v1626_v41 = vld [vmem:[%s1938_s21 + $0x28] sm:$0xff]  }
  0x72   : > { %587 = vrot.lane.b32.xlu1 %v1604_v44, %s1737_s23  ;;  %579 = vrot.lane.b32.xlu0 %v1605_v45, %s1737_s23  ;;  %v1622_v44 = vld [vmem:[%s1938_s21 + $0x8] sm:$0xff]  }
  0x76   : > { %589 = vrot.lane.b32.xlu1 %v1606_v46, %s1737_s23  ;;  %581 = vrot.lane.b32.xlu0 %v1607_v47, %s1737_s23  ;;  %s2222_s23 = smov 24  }
  0x7a   : > { %643 = vrot.lane.b32.xlu1 %v1608_v48, %s1738_s22  ;;  %635 = vrot.lane.b32.xlu0 %v1609_v49, %s1738_s22 }
  0x7e   : > { %645 = vrot.lane.b32.xlu1 %v1610_v50, %s1738_s22  ;;  %637 = vrot.lane.b32.xlu0 %v1611_v51, %s1738_s22  ;;  %s2223_s22 = smov 28  }
  0x82   : > { %699 = vrot.lane.b32.xlu1 %v1612_v52, %s2221_s7  ;;  %691 = vrot.lane.b32.xlu0 %v1613_v53, %s2221_s7 }
  0x86   : > { %701 = vrot.lane.b32.xlu1 %v1614_v54, %s2221_s7  ;;  %693 = vrot.lane.b32.xlu0 %v1615_v55, %s2221_s7  ;;  %s1743_s7 = smov [#allocation2]  }
  0x8a   : > { %755 = vrot.lane.b32.xlu1 %v1616_v56, %s2222_s23  ;;  %747 = vrot.lane.b32.xlu0 %v1617_v57, %s2222_s23 }
  0x8e   : > { %757 = vrot.lane.b32.xlu1 %v1618_v58, %s2222_s23  ;;  %749 = vrot.lane.b32.xlu0 %v1619_v59, %s2222_s23  ;;  %s1643_s23 = sshll.u32 %s1743_s7, 4  ;;  %s1644_s23 = int_to_ptr.vmem [resolvable:$false] %s1643_s23 }
  0x92   : > { %811 = vrot.lane.b32.xlu1 %v1620_v60, %s2223_s22  ;;  %803 = vrot.lane.b32.xlu0 %v1621_v61, %s2223_s22 }
  0x94   : > { %v2009_v0 = vpop.permute.xlu1 %465  ;;  %v464_v1 = vpop.permute.xlu0 %463 }
  0x95   : > { %v874_v33 = vsel %vm871_vm1, %v1623_v29, %v464_v1  ;;  %v877_v55 = vsel %vm871_vm1, %v1622_v44, %v2009_v0 }
  0x96   : > { %813 = vrot.lane.b32.xlu1 %v1624_v62, %s2223_s22  ;;  %805 = vrot.lane.b32.xlu0 %v1625_v63, %s2223_s22  ;;  %s1645_s22 = scalar_lea.vmem %s1644_s23, 4096 }
  0x98   : > { %v2015_v4 = vpop.permute.xlu1 %473  ;;  %v472_v5 = vpop.permute.xlu0 %471 }
  0x99   : > { %v886_v32 = vsel %vm871_vm1, %v1627_v28, %v472_v5  ;;  %v889_v53 = vsel %vm871_vm1, %v1626_v41, %v2015_v4 }
  0x9a   : > { %867 = vrot.lane.b32.xlu1 %v1628_v2, %s1742_s29  ;;  %859 = vrot.lane.b32.xlu0 %v1629_v3, %s1742_s29 }
  0x9c   : > { %v528_v8 = vpop.permute.xlu1 %527  ;;  %v520_v9 = vpop.permute.xlu0 %519 }
  0x9d   : > { %v906_v34 = vsel %vm896_vm2, %v886_v32, %v528_v8  ;;  %v898_v35 = vsel %vm896_vm2, %v874_v33, %v520_v9  ;;  %v1634_v32 = vld [vmem:[%s1938_s21 + $0x30] sm:$0xff]  }
  0x9e   : > { %869 = vrot.lane.b32.xlu1 %v1630_v6, %s1742_s29  ;;  %861 = vrot.lane.b32.xlu0 %v1631_v7, %s1742_s29  ;;  %v1635_v33 = vld [vmem:[%s1938_s21 + $0x10] sm:$0xff]   ;;  %s1414_s29 = sshll.u32 %s1721_s16, 5  ;;  %s1208_s16 = sshll.u32 %s2111_s6, 4  ;;  %s2137_s16 = int_to_ptr.vmem [resolvable:$true] %s1208_s16 }
  0x9f   : > { %s1639_s24 = scalar_lea.vmem %s2137_s16, 2048  ;;  %p1646_p2 = scmp.lt.s32.totalorder %s2137_s16, %s1644_s23 }
  0xa0   : > { %v530_v10 = vpop.permute.xlu1 %529  ;;  %v522_v11 = vpop.permute.xlu0 %521  ;;  %p1640_p13 = scmp.ne.s32.totalorder %s2137_s16, %s1639_s24  ;;  %p1647_p4 = scmp.lt.s32.totalorder %s1645_s22, %s1639_s24 }
  0xa1   : > { %v908_v56 = vsel %vm896_vm2, %v889_v53, %v530_v10  ;;  %v900_v57 = vsel %vm896_vm2, %v877_v55, %v522_v11 }
  0xa2   : > { %p1641_p0 = pnand %p1640_p13, %p1816_p3  ;;  %p1648_p5 = por %p1647_p4, %p1646_p2 }
  0xa4   : > { %v584_v12 = vpop.permute.xlu1 %583  ;;  %v576_v13 = vpop.permute.xlu0 %575  ;;  %p1642_p1 = pneg %p1641_p0 }
  0xa5   : > { %v923_v36 = vsel %vm913_vm3, %v906_v34, %v584_v12  ;;  %v915_v38 = vsel %vm913_vm3, %v898_v35, %v576_v13 }
  0xa6   : > { %p1649_p6 = pnand %p1648_p5, %p1642_p1 }
  0xa8   : > { %v586_v14 = vpop.permute.xlu1 %585  ;;  %v578_v15 = vpop.permute.xlu0 %577 }
  0xa9   : > { %v925_v58 = vsel %vm913_vm3, %v908_v56, %v586_v14  ;;  %v917_v60 = vsel %vm913_vm3, %v900_v57, %v578_v15 }
  0xac   : > { %v640_v16 = vpop.permute.xlu1 %639  ;;  %v632_v17 = vpop.permute.xlu0 %631 }
  0xad   : > { %v940_v39 = vsel %vm930_vm4, %v923_v36, %v640_v16  ;;  %v932_v42 = vsel %vm930_vm4, %v915_v38, %v632_v17 }
  0xb0   : > { %v642_v18 = vpop.permute.xlu1 %641  ;;  %v634_v19 = vpop.permute.xlu0 %633 }
  0xb1   : > { %v942_v61 = vsel %vm930_vm4, %v925_v58, %v642_v18  ;;  %v934_v63 = vsel %vm930_vm4, %v917_v60, %v634_v19 }
  0xb4   : > { %v696_v20 = vpop.permute.xlu1 %695  ;;  %v688_v21 = vpop.permute.xlu0 %687 }
  0xb5   : > { %v957_v43 = vsel %vm947_vm5, %v940_v39, %v696_v20  ;;  %v949_v45 = vsel %vm947_vm5, %v932_v42, %v688_v21  ;;  %v1638_v39 = vld [vmem:[%s1938_s21 + $0x18] sm:$0xff]  }
  0xb8   : > { %v698_v22 = vpop.permute.xlu1 %697  ;;  %v690_v23 = vpop.permute.xlu0 %689 }
  0xb9   : > { %v959_v1 = vsel %vm947_vm5, %v942_v61, %v698_v22  ;;  %v951_v0 = vsel %vm947_vm5, %v934_v63, %v690_v23 }
  0xbc   : > { %v752_v24 = vpop.permute.xlu1 %751  ;;  %v744_v25 = vpop.permute.xlu0 %743 }
  0xbd   : > { %v974_v46 = vsel %vm964_vm6, %v957_v43, %v752_v24  ;;  %v966_v47 = vsel %vm964_vm6, %v949_v45, %v744_v25 }
  0xc0   : > { %v754_v26 = vpop.permute.xlu1 %753  ;;  %v746_v27 = vpop.permute.xlu0 %745 }
  0xc1   : > { %v976_v2 = vsel %vm964_vm6, %v959_v1, %v754_v26  ;;  %v968_v3 = vsel %vm964_vm6, %v951_v0, %v746_v27 }
  0xc4   : > { %v808_v30 = vpop.permute.xlu1 %807  ;;  %v800_v31 = vpop.permute.xlu0 %799 }
  0xc5   : > { %v991_v48 = vsel %vm981_vm7, %v974_v46, %v808_v30  ;;  %v983_v50 = vsel %vm981_vm7, %v966_v47, %v800_v31 }
  0xc8   : > { %v810_v37 = vpop.permute.xlu1 %809  ;;  %v802_v40 = vpop.permute.xlu0 %801 }
  0xc9   : > { %v993_v4 = vsel %vm981_vm7, %v976_v2, %v810_v37  ;;  %v985_v6 = vsel %vm981_vm7, %v968_v3, %v802_v40  ;;  %v1637_v37 = vld [vmem:[%s1938_s21 + $0x38] sm:$0xff]   ;;  %s2123_s21 = sadd.s32 %s1414_s29, %s1413_s0 }
  0xca   : > { %s1415_s15 = sshll.u32 %s2123_s21, 7 }
  0xcb   : > { %s2133_s20 = scalar_lea.hbm %s2200_s3, %s1415_s15 }
  0xcc   : > { %v864_v49 = vpop.permute.xlu1 %863  ;;  %v856_v51 = vpop.permute.xlu0 %855 }
  0xcd   : > { %v1008_v52 = vsel %vm998_vm8, %v991_v48, %v864_v49  ;;  %v1000_v54 = vsel %vm998_vm8, %v983_v50, %v856_v51 }
  0xce   : > { %1467 = vmatprep.mubr.msk.bf16.mxu1 %vm1042_vm9, %v1008_v52  ;;  %1459 = vmatprep.mubr.msk.bf16.mxu0 %vm1042_vm9, %v1000_v54 }
  0xd0   : > { %v476_v59 = vpop.permute.xlu1 %475  ;;  %v468_v62 = vpop.permute.xlu0 %467 }
  0xd1   : > { %v892_v36 = vsel %vm871_vm1, %v1634_v32, %v476_v59  ;;  %v880_v38 = vsel %vm871_vm1, %v1635_v33, %v468_v62 }
  0xd4   : > { %v866_v5 = vpop.permute.xlu1 %865  ;;  %v858_v8 = vpop.permute.xlu0 %857 }
  0xd5   : > { %v1010_v7 = vsel %vm998_vm8, %v993_v4, %v866_v5  ;;  %v1002_v9 = vsel %vm998_vm8, %v985_v6, %v858_v8 }
  0xd6   : > { %1468 = vmatmul.mubr.msk.bf16.vlgmr.msra.gmra.mrb[0].mxu1 %vm1042_vm9, %v1010_v7  ;;  %1460 = vmatmul.mubr.msk.bf16.vlgmr.msra.gmra.mrb[0].mxu0 %vm1042_vm9, %v1002_v9 }
  0xd8   : > { %v478_v10 = vpop.permute.xlu1 %477  ;;  %v470_v11 = vpop.permute.xlu0 %469 }
  0xd9   : > { %v895_v47 = vsel %vm871_vm1, %v1637_v37, %v478_v10  ;;  %v883_v50 = vsel %vm871_vm1, %v1638_v39, %v470_v11 }
  0xdc   : > { %v532_v12 = vpop.permute.xlu1 %531  ;;  %v524_v13 = vpop.permute.xlu0 %523 }
  0xdd   : > { %v910_v40 = vsel %vm896_vm2, %v892_v36, %v532_v12  ;;  %v902_v41 = vsel %vm896_vm2, %v880_v38, %v524_v13  ;;  %v1400_v12 = vld [vmem:[%s2199_s2] ss:$0 sm:$0xff] }
  0xe0   : > { %v534_v14 = vpop.permute.xlu1 %533  ;;  %v526_v15 = vpop.permute.xlu0 %525 }
  0xe1   : > { %v912_v51 = vsel %vm896_vm2, %v895_v47, %v534_v14  ;;  %v904_v54 = vsel %vm896_vm2, %v883_v50, %v526_v15 }
  0xe4   : > { %v588_v16 = vpop.permute.xlu1 %587  ;;  %v580_v17 = vpop.permute.xlu0 %579 }
  0xe5   : > { %v927_v42 = vsel %vm913_vm3, %v910_v40, %v588_v16  ;;  %v919_v44 = vsel %vm913_vm3, %v902_v41, %v580_v17 }
  0xe8   : > { %v590_v18 = vpop.permute.xlu1 %589  ;;  %v582_v19 = vpop.permute.xlu0 %581 }
  0xe9   : > { %v929_v55 = vsel %vm913_vm3, %v912_v51, %v590_v18  ;;  %v921_v59 = vsel %vm913_vm3, %v904_v54, %v582_v19 }
  0xec   : > { %v644_v20 = vpop.permute.xlu1 %643  ;;  %v636_v21 = vpop.permute.xlu0 %635 }
  0xed   : > { %v944_v45 = vsel %vm930_vm4, %v927_v42, %v644_v20  ;;  %v936_v48 = vsel %vm930_vm4, %v919_v44, %v636_v21 }
  0xf0   : > { %v646_v22 = vpop.permute.xlu1 %645  ;;  %v638_v23 = vpop.permute.xlu0 %637 }
  0xf1   : > { %v946_v60 = vsel %vm930_vm4, %v929_v55, %v646_v22  ;;  %v938_v1 = vsel %vm930_vm4, %v921_v59, %v638_v23 }
  0xf4   : > { %v700_v24 = vpop.permute.xlu1 %699  ;;  %v692_v25 = vpop.permute.xlu0 %691 }
  0xf5   : > { %v961_v49 = vsel %vm947_vm5, %v944_v45, %v700_v24  ;;  %v953_v52 = vsel %vm947_vm5, %v936_v48, %v692_v25 }
  0xf8   : > { %v702_v26 = vpop.permute.xlu1 %701  ;;  %v694_v27 = vpop.permute.xlu0 %693 }
  0xf9   : > { %v963_v0 = vsel %vm947_vm5, %v946_v60, %v702_v26  ;;  %v955_v3 = vsel %vm947_vm5, %v938_v1, %v694_v27 }
  0xfc   : > { %v756_v28 = vpop.permute.xlu1 %755  ;;  %v748_v29 = vpop.permute.xlu0 %747 }
  0xfd   : > { %v978_v53 = vsel %vm964_vm6, %v961_v49, %v756_v28  ;;  %v970_v56 = vsel %vm964_vm6, %v953_v52, %v748_v29 }
 0x100   : > { %v758_v30 = vpop.permute.xlu1 %757  ;;  %v750_v31 = vpop.permute.xlu0 %749 }
 0x101   : > { %v980_v4 = vsel %vm964_vm6, %v963_v0, %v758_v30  ;;  %v972_v5 = vsel %vm964_vm6, %v955_v3, %v750_v31 }
 0x104   : > { %v812_v34 = vpop.permute.xlu1 %811  ;;  %v804_v35 = vpop.permute.xlu0 %803 }
 0x105   : > { %v995_v57 = vsel %vm981_vm7, %v978_v53, %v812_v34  ;;  %v987_v61 = vsel %vm981_vm7, %v970_v56, %v804_v35 }
 0x108   : > { %v814_v43 = vpop.permute.xlu1 %813  ;;  %v806_v46 = vpop.permute.xlu0 %805 }
 0x109   : > { %v997_v6 = vsel %vm981_vm7, %v980_v4, %v814_v43  ;;  %v989_v8 = vsel %vm981_vm7, %v972_v5, %v806_v46 }
 0x10c   : > { %v868_v58 = vpop.permute.xlu1 %867  ;;  %v860_v63 = vpop.permute.xlu0 %859 }
 0x10d   : > { %v1012_v62 = vsel %vm998_vm8, %v995_v57, %v868_v58  ;;  %v1004_v2 = vsel %vm998_vm8, %v987_v61, %v860_v63 }
 0x10e   : > { %1471 = vmatprep.mubr.msk.bf16.mxu1 %vm1042_vm9, %v1012_v62  ;;  %1463 = vmatprep.mubr.msk.bf16.mxu0 %vm1042_vm9, %v1004_v2 }
 0x110   : > { %v870_v7 = vpop.permute.xlu1 %869  ;;  %v862_v10 = vpop.permute.xlu0 %861 }
 0x111   : > { %v1014_v9 = vsel %vm998_vm8, %v997_v6, %v870_v7  ;;  %v1006_v11 = vsel %vm998_vm8, %v989_v8, %v862_v10 }
 0x112   : > { %1472 = vmatmul.mubr.msk.bf16.gmra.mrb[4].mxu1 %vm1042_vm9, %v1014_v9  ;;  %1464 = vmatmul.mubr.msk.bf16.gmra.mrb[4].mxu0 %vm1042_vm9, %v1006_v11 }
 0x1a9   : > { %v1469_v13 = vpop.f32.mrb[0].mxu1  ;;  %v1461_v14 = vpop.f32.mrb[0].mxu0 }
 0x1aa   : > { %v1138_v15 = vadd.f32 %v1469_v13, %v1400_v12  ;;  %v1129_v16 = vpop.f32.mrb[1].mxu1  ;;  %v1106_v17 = vadd.f32 %v1461_v14, %v1400_v12  ;;  %v1097_v18 = vpop.f32.mrb[1].mxu0 }
 0x1ab   : > { %v1130_v19 = vadd.f32 %v1400_v12, %v1129_v16  ;;  %v1470_v20 = vpop.f32.mrb[2].mxu1  ;;  %v1098_v22 = vadd.f32 %v1400_v12, %v1097_v18  ;;  %v1462_v23 = vpop.f32.mrb[2].mxu0 }
 0x1ac   : > { %v1170_v21 = vmax.f32 %v1138_v15, 0.0  ;;  %v1141_v24 = vadd.f32 %v1470_v20, %v1400_v12  ;;  %v1132_v25 = vpop.f32.mrb[3].mxu1  ;;  %v1162_v26 = vmax.f32 %v1106_v17, 0.0  ;;  %v1109_v28 = vadd.f32 %v1462_v23, %v1400_v12  ;;  %v1100_v29 = vpop.f32.mrb[3].mxu0 }
 0x1ad   : > { %v1168_v27 = vmax.f32 %v1130_v19, 0.0  ;;  %v1133_v30 = vadd.f32 %v1400_v12, %v1132_v25  ;;  %v1160_v31 = vmax.f32 %v1098_v22, 0.0  ;;  %v1101_v33 = vadd.f32 %v1400_v12, %v1100_v29 }
 0x1ae   : > { %1186 = vst [vmem:[%s2111_s6 + $0x50] sm:$0xff] %v1170_v21  ;;  %v1171_v32 = vmax.f32 %v1141_v24, 0.0  ;;  %1178 = vst [vmem:[%s2111_s6 + $0x10] sm:$0xff] %v1162_v26  ;;  %v1163_v34 = vmax.f32 %v1109_v28, 0.0 }
 0x1af   : > { %1184 = vst [vmem:[%s2111_s6 + $0x40] sm:$0xff] %v1168_v27  ;;  %v1169_v35 = vmax.f32 %v1133_v30, 0.0  ;;  %1176 = vst [vmem:[%s2111_s6] sm:$0xff] %v1160_v31  ;;  %v1161_v36 = vmax.f32 %v1101_v33, 0.0 }
 0x1b0   : > { %1187 = vst [vmem:[%s2111_s6 + $0x58] sm:$0xff] %v1171_v32  ;;  %1179 = vst [vmem:[%s2111_s6 + $0x18] sm:$0xff] %v1163_v34 }
 0x1b1   : > { %1185 = vst [vmem:[%s2111_s6 + $0x48] sm:$0xff] %v1169_v35  ;;  %1177 = vst [vmem:[%s2111_s6 + $0x8] sm:$0xff] %v1161_v36 }
 0x1e5   : > { %v1473_v37 = vpop.f32.mrb[4].mxu1  ;;  %v1465_v38 = vpop.f32.mrb[4].mxu0 }
 0x1e6   : > { %v1154_v39 = vadd.f32 %v1473_v37, %v1400_v12  ;;  %v1145_v40 = vpop.f32.mrb[5].mxu1  ;;  %v1122_v41 = vadd.f32 %v1465_v38, %v1400_v12  ;;  %v1113_v42 = vpop.f32.mrb[5].mxu0 }
 0x1e7   : > { %v1146_v43 = vadd.f32 %v1400_v12, %v1145_v40  ;;  %v1474_v44 = vpop.f32.mrb[6].mxu1  ;;  %v1114_v46 = vadd.f32 %v1400_v12, %v1113_v42  ;;  %v1466_v47 = vpop.f32.mrb[6].mxu0 }
 0x1e8   : > { %v1174_v45 = vmax.f32 %v1154_v39, 0.0  ;;  %v1157_v48 = vadd.f32 %v1474_v44, %v1400_v12  ;;  %v1148_v49 = vpop.f32.mrb[7].mxu1  ;;  %v1166_v50 = vmax.f32 %v1122_v41, 0.0  ;;  %v1125_v52 = vadd.f32 %v1466_v47, %v1400_v12  ;;  %v1116_v53 = vpop.f32.mrb[7].mxu0 }
 0x1e9   : > { %v1172_v51 = vmax.f32 %v1146_v43, 0.0  ;;  %v1149_v54 = vadd.f32 %v1400_v12, %v1148_v49  ;;  %v1164_v55 = vmax.f32 %v1114_v46, 0.0  ;;  %v1117_v57 = vadd.f32 %v1400_v12, %v1116_v53 }
 0x1ea   : > { %1190 = vst [vmem:[%s2111_s6 + $0x70] sm:$0xff] %v1174_v45  ;;  %v1175_v56 = vmax.f32 %v1157_v48, 0.0  ;;  %1182 = vst [vmem:[%s2111_s6 + $0x30] sm:$0xff] %v1166_v50  ;;  %v1167_v58 = vmax.f32 %v1125_v52, 0.0 }
 0x1eb   : > { %1188 = vst [vmem:[%s2111_s6 + $0x60] sm:$0xff] %v1172_v51  ;;  %v1173_v59 = vmax.f32 %v1149_v54, 0.0  ;;  %1180 = vst [vmem:[%s2111_s6 + $0x20] sm:$0xff] %v1164_v55  ;;  %v1165_v60 = vmax.f32 %v1117_v57, 0.0 }
 0x1ec   : > { %1191 = vst [vmem:[%s2111_s6 + $0x78] sm:$0xff] %v1175_v56  ;;  %1183 = vst [vmem:[%s2111_s6 + $0x38] sm:$0xff] %v1167_v58 }
 0x1ed   : > { %1189 = vst [vmem:[%s2111_s6 + $0x68] sm:$0xff] %v1173_v59  ;;  %1181 = vst [vmem:[%s2111_s6 + $0x28] sm:$0xff] %v1165_v60 }
 0x1ee   : > { %1652 = shalt.err (!%p1649_p6)
}
 0x1ef   : > { %s1653_s11 = scalar_lea.hbm %s2133_s20, 2048  ;;  %s1657_s28 = scalar_lea.hbm %s2200_s3, 8192 }
 0x1f0   : > { %p1654_p7 = scmp.ne.s32.totalorder %s2133_s20, %s1653_s11  ;;  %p1658_p11 = scmp.lt.u32.totalorder %s2133_s20, %s2200_s3 }
 0x1f1   : > { %p1659_p12 = scmp.lt.u32.totalorder %s1657_s28, %s1653_s11  ;;  %p1661_p0 = scmp.lt.u32.totalorder %s1653_s11, %s2133_s20 }
 0x1f2   : > { %p1655_p9 = pnand %p1654_p7, %p1816_p3 }
 0x1f3   : > { %p1660_p13 = por %p1659_p12, %p1658_p11 }
 0x1f4   : > { %p1656_p10 = pneg %p1655_p9 }
 0x1f5   : > { %p1662_p1 = por %p1661_p0, %p1660_p13 }
 0x1f7   : > { %p1663_p2 = pnand %p1662_p1, %p1656_p10 }
 0x1f9   : > { %1666 = shalt.err (!%p1663_p2)
}
 0x1fa   : > { %s1744_s29 = smov 128  }
 0x1fb   : > { %1484 = dma.vmem_to_hbm [thread:$0]  (%p1816_p3), %s2137_s16, 2048, %s2133_s20, %s2144_s27, %s1744_s29, %s1744_s29, %s2220_s9  }
 0x1fc PF: > { %p1490_p4 = scmp.ge.s32.totalorder %s1733_s19, 2  ;;  %s1223_s21 = sand.u32 1, %s1705_s12  }
 0x1fd   : > { %s1224_s15 = scalar_lea.sflag [#allocation3], %s1223_s21 }
 0x1fe   : > { %p1487_p5 = pnand %p1490_p4, %p1825_p8 }
 0x200   : > { %1700 = dma.done.wait (!%p1487_p5), %s1224_s15, 2048  }
 0x201   : > { %1702 = vsyncadd (!%p1487_p5), %s1224_s15, 4294965248  ;;  %s16_s19 = sadd.s32 1, %s1733_s19   ;;  %s2224_s25 = sld [smem:[#allocation5_spill]] }
 0x202   : > { %p13_p6 = scmp.ge.s32.totalorder %s16_s19, 6   ;;  %s2225_s9 = sld [smem:[#allocation6_spill]] }
 0x203   : > { %s2226_s12 = smov %s1709_s13  ;;  %s2227_s13 = smov %s1713_s14 }
 0x204   : > { %s2228_s14 = smov %s1834_s30  ;;  %s2229_s15 = smov %s1725_s17 }
 0x205   : > { %s2230_s16 = smov %s1729_s18  ;;  %15 = sbr.rel (!%p13_p6) target bundleno = 7 (0x7), region = 76 }
 0x207   : > { %s2231_s17 = smov %s2224_s25 }
 0x208   : > { %s2232_s18 = smov %s2225_s9 }
 0x20c   :  { %1229 = vsyncpa [#allocation3], 1 }
 0x20d   :  { %1231 = vsyncpa [#allocation3 + $0x1], 1 }

// kernel: tpu_custom_call.1
= control target key start
LH: loop header
LB: loop body
LE: loop exit
PB: predicated region body
PF: predicated region fallthrough
CT: control target
= control target key end

     0   :  { %s2197_s0 = inlined_call_operand.vmem [shape: bf16[2,384,4], index: 0, kind: input, shape index: {}]   ;;  %s2198_s1 = inlined_call_operand.vmem [shape: bf16[36,128], index: 1, kind: input, shape index: {}]   ;;  %s2199_s2 = inlined_call_operand.vmem [shape: f32[1,128], index: 2, kind: input, shape index: {}]   ;;  %s2200_s3 = inlined_call_operand.hbm [shape: f32[2,256,128], index: 3, kind: output, shape index: {}]  }
   0x1   :  { %2213 = sst [smem:[#allocation7_spill]] %s2197_s0 }
   0x2   :  { %8 = vsyncpa [#allocation3], 0 }
   0x3   :  { %10 = vsyncpa [#allocation3 + $0x1], 0  ;;  %s1765_s12 = smov 0   ;;  %s1767_s13 = smov 0  }
   0x4   :  { %s1769_s14 = smov 0   ;;  %s1771_s15 = smov 0  }
   0x5   :  { %s1773_s16 = smov 0   ;;  %s1775_s17 = smov 0  }
   0x6   :  { %s1777_s18 = smov 0   ;;  %s1779_s19 = smov 0  }
   0x7 LB: > { %s1302_s20 = sadd.s32 4294967295, %s1733_s19   ;;  %s1303_s21 = sadd.s32 4294967294, %s1733_s19   ;;  %s1733_s19 = sphi %s1779_s19, %s16_s19   ;;  %s1729_s18 = sphi %s1777_s18, %s2232_s18   ;;  %s1725_s17 = sphi %s1775_s17, %s2231_s17   ;;  %s1721_s16 = sphi %s1773_s16, %s2230_s16   ;;  %s1717_s15 = sphi %s1771_s15, %s2229_s15   ;;  %s1713_s14 = sphi %s1769_s14, %s2228_s14   ;;  %s1709_s13 = sphi %s1767_s13, %s2227_s13   ;;  %s1705_s12 = sphi %s1765_s12, %s2226_s12  }
   0x8   : > { %s25_s22 = sadd.s32 1, %s1725_s17  ;;  %s28_s23 = sadd.s32 1, %s1729_s18 }
   0x9   : > { %p26_p0 = scmp.ge.s32.totalorder %s25_s22, 2  ;;  %p115_p1 = scmp.ne.s32.totalorder %s1713_s14, %s1709_s13 }
   0xa   : > { %p116_p2 = scmp.eq.s32.totalorder %s1302_s20, 3  ;;  %p121_p5 = scmp.ne.s32.totalorder %s1709_s13, %s1705_s12 }
   0xb   : > { %s2234_s22 = smov (%p26_p0, %s25_s22), 0  ;;  %s2236_s23 = smov (!%p26_p0, %s28_s23), %s1729_s18 }
   0xc   : > { %2214 = sst [smem:[#allocation5_spill]] %s2234_s22  ;;  %s101_s24 = ssub.s32 %s1725_s17, %s2234_s22 }
   0xd   : > { %p1816_p3 = por %p116_p2, %p115_p1  ;;  %p30_p4 = scmp.ge.s32.totalorder %s2236_s23, 2 }
   0xe   : > { %p122_p6 = scmp.eq.s32.totalorder %s1303_s21, 3  ;;  %p1306_p7 = scmp.ge.s32.totalorder %s1733_s19, 1 }
   0xf   : > { %s2238_s23 = smov (%p30_p4, %s2236_s23), 0  ;;  %p154_p9 = scmp.lt.s32.totalorder %s1733_s19, 5 }
  0x10   : > { %2216 = sst [smem:[#allocation6_spill]] %s2238_s23  ;;  %p1825_p8 = por %p122_p6, %p121_p5 }
  0x11   : > { %s100_s27 = ssub.s32 %s1729_s18, %s2238_s23  ;;  %s105_s28 = sadd.s32 1, %s1713_s14 }
  0x12   : > { %s102_s29 = sor.u32 %s101_s24, %s100_s27  ;;  %p155_p10 = pnand %p1306_p7, %p154_p9 }
  0x13   : > { %p103_p11 = scmp.eq.s32.totalorder %s102_s29, 0  ;;  %p178_p12 = scmp.lt.s32.totalorder (!%p155_p10), %s1721_s16, 1  ;;  %v1632_v36 = vld [vmem:[%s2198_s1] sm:$0xff] (!%p155_p10)   ;;  %v1633_v37 = vld [vmem:[%s2198_s1 + $0x8] sm:$0xff] (!%p155_p10)   ;;  %vm1059_vm0 = vcmask (!%p155_p10), 1041408   ;;  %vm871_vm1 = vcmask (!%p155_p10), 31744  }
  0x14   : > { %158 = sbr.rel (%p155_p10) target bundleno = 508 (0x1fc), region = 32  ;;  %s1838_s4 = sshll.u32 (!%p155_p10), %s1717_s15, 7  ;;  %1453 = vmatprep.subr.bf16.mxu0 (!%p155_p10), %v1632_v36  ;;  %1475 = vmatprep.subr.bf16.mxu1 (!%p155_p10), %v1632_v36  ;;  %v1636_v40 = vld [vmem:[%s2198_s1 + $0x10] ss:$0 sps:$4 sm:$0x33] (!%p155_p10)   ;;  %vm896_vm2 = vcmask (!%p155_p10), 64512  }
  0x15   : > { %s1834_s30 = scalar_select %p103_p11, %s1713_s14, %s105_s28  }
  0x16   : > { %s1419_s5 = sadd.s32 (!%p155_p10), 16, %s1838_s4  ;;  %s1421_s8 = sadd.s32 (!%p155_p10), 32, %s1838_s4  ;;  %1454 = vmatpush3.bf16.msra.mxu0 (!%p155_p10), %v1632_v36  ;;  %1478 = vmatpush3.bf16.msra.mxu1 (!%p155_p10), %v1632_v36  ;;  %v1061_v43 = vsel (!%p155_p10), %vm1059_vm0, %v1636_v40, 0  ;;  %vm913_vm3 = vcmask (!%p155_p10), 97280   ;;  %vm930_vm4 = vcmask (!%p155_p10), 130048   ;;  %vm947_vm5 = vcmask (!%p155_p10), 162816  }
  0x17   : > { %s209_s7 = sshra.s32 (!%p155_p10), %s1419_s5, 3  ;;  %s231_s11 = sshra.s32 (!%p155_p10), %s1421_s8, 3  ;;  %1455 = vmatprep.subr.bf16.mxu0 (!%p155_p10), %v1633_v37  ;;  %1476 = vmatprep.subr.bf16.mxu1 (!%p155_p10), %v1633_v37  ;;  %vm964_vm6 = vcmask (!%p155_p10), 195584   ;;  %vm981_vm7 = vcmask (!%p155_p10), 228352   ;;  %vm998_vm8 = vcmask (!%p155_p10), 261120   ;;  %vm1042_vm9 = vcmask (!%p155_p10), 293888  }
  0x18   : > { %s1313_s10 = sshll.u32 (!%p155_p10), %s209_s7, 2  ;;  %s2218_s0 = sld [smem:[#allocation7_spill]] (!%p155_p10) }
  0x19   : > { %s1315_s28 = sshll.u32 (!%p155_p10), %s231_s11, 2  ;;  %s1423_s29 = sadd.s32 (!%p155_p10), 48, %s1838_s4 }
  0x1a   : > { %s253_s5 = sshra.s32 (!%p155_p10), %s1423_s29, 3  ;;  %s1427_s21 = sadd.s32 (!%p155_p10), 80, %s1838_s4  ;;  %1456 = vmatpush3.bf16.msra.mxu0 (!%p155_p10), %v1633_v37  ;;  %1479 = vmatpush3.bf16.msra.mxu1 (!%p155_p10), %v1633_v37 }
  0x1b   : > { %s179_s6 = scalar_select %p178_p12, %s1721_s16, 1  ;;  %1481 = vmatprep.subr.msk.bf16.mxu0 %vm1059_vm0, %v1636_v40  ;;  %1482 = vmatprep.subr.msk.bf16.mxu1 %vm1059_vm0, %v1636_v40 }
  0x1c   : > { %s1317_s8 = sshll.u32 %s253_s5, 2  ;;  %s2204_s29 = smov 8  }
  0x1d   : > { %s1483_s9 = smul.u32 192, %s179_s6  ;;  %s2201_s6 = smov 4  }
  0x1e   : > { %s1737_s23 = smov 12   ;;  %s1738_s22 = smov 16   ;;  %1458 = vmatpush3.bf16.msra.mxu0 %v1061_v43  ;;  %1480 = vmatpush3.bf16.msra.mxu1 %v1061_v43 }
  0x1f   : > { %s1846_s24 = scalar_lea.vmem %s2218_s0, %s1483_s9  ;;  %s1425_s9 = sadd.s32 64, %s1838_s4 }
  0x20   : > { %s1849_s27 = scalar_lea.vmem %s1846_s24, %s1313_s10  ;;  %s1859_s7 = scalar_lea.vmem %s1846_s24, %s1315_s28 }
  0x21   : > { %v1564_v0 = vld [vmem:[%s1849_s27 + $0x8] sm:$0xff]   ;;  %v1565_v1 = vld [vmem:[%s1849_s27] sm:$0xff]   ;;  %s275_s10 = sshra.s32 %s1425_s9, 3  ;;  %s1867_s11 = scalar_lea.vmem %s1846_s24, %s1317_s8  ;;  %v1594_v30 = vld [vmem:[%s1849_s27 + $0x30] sm:$0xff]  }
  0x22   : > { %465 = vrot.lane.b32.xlu1 %v1564_v0, %s2201_s6  ;;  %v1566_v2 = vld [vmem:[%s1849_s27 + $0x28] sm:$0xff]   ;;  %463 = vrot.lane.b32.xlu0 %v1565_v1, %s2201_s6  ;;  %v1567_v3 = vld [vmem:[%s1849_s27 + $0x20] sm:$0xff]   ;;  %s1319_s20 = sshll.u32 %s275_s10, 2  ;;  %s297_s28 = sshra.s32 %s1427_s21, 3 }
  0x23   : > { %v1568_v4 = vld [vmem:[%s1859_s7 + $0x20] sm:$0xff]   ;;  %v1570_v6 = vld [vmem:[%s1859_s7 + $0x28] sm:$0xff]   ;;  %s1875_s5 = scalar_lea.vmem %s1846_s24, %s1319_s20  ;;  %s1321_s8 = sshll.u32 %s297_s28, 2  ;;  %v1595_v31 = vld [vmem:[%s1849_s27 + $0x10] sm:$0xff]  }
  0x24   : > { %v1569_v5 = vld [vmem:[%s1859_s7] sm:$0xff]   ;;  %v1571_v7 = vld [vmem:[%s1859_s7 + $0x8] sm:$0xff]   ;;  %s1429_s9 = sadd.s32 96, %s1838_s4  ;;  %s1883_s10 = scalar_lea.vmem %s1846_s24, %s1321_s8  ;;  %v1598_v34 = vld [vmem:[%s1849_s27 + $0x38] sm:$0xff]  }
  0x25   : > { %v1572_v8 = vld [vmem:[%s1867_s11 + $0x20] sm:$0xff]   ;;  %s1431_s20 = sadd.s32 112, %s1838_s4  ;;  %v1574_v10 = vld [vmem:[%s1867_s11 + $0x28] sm:$0xff]   ;;  %s1433_s8 = sadd.s32 128, %s1838_s4  ;;  %v1599_v35 = vld [vmem:[%s1849_s27 + $0x18] sm:$0xff]  }
  0x26   : > { %473 = vrot.lane.b32.xlu1 %v1566_v2, %s2201_s6  ;;  %471 = vrot.lane.b32.xlu0 %v1567_v3, %s2201_s6  ;;  %s319_s6 = sshra.s32 %s1429_s9, 3  ;;  %v1573_v9 = vld [vmem:[%s1867_s11] sm:$0xff]   ;;  %s341_s0 = sshra.s32 %s1431_s20, 3  ;;  %v1575_v11 = vld [vmem:[%s1867_s11 + $0x8] sm:$0xff]  }
  0x27   : > { %s1323_s21 = sshll.u32 %s319_s6, 2  ;;  %s1325_s9 = sshll.u32 %s341_s0, 2  ;;  %v1576_v12 = vld [vmem:[%s1875_s5 + $0x20] sm:$0xff]   ;;  %v1578_v14 = vld [vmem:[%s1875_s5 + $0x28] sm:$0xff]   ;;  %v1600_v38 = vld [vmem:[%s1859_s7 + $0x30] sm:$0xff]  }
  0x28   : > { %s1891_s28 = scalar_lea.vmem %s1846_s24, %s1323_s21  ;;  %v1577_v13 = vld [vmem:[%s1875_s5] sm:$0xff]   ;;  %s1899_s6 = scalar_lea.vmem %s1846_s24, %s1325_s9  ;;  %v1579_v15 = vld [vmem:[%s1875_s5 + $0x8] sm:$0xff]   ;;  %v1601_v39 = vld [vmem:[%s1859_s7 + $0x10] sm:$0xff]  }
  0x29   : > { %v1580_v16 = vld [vmem:[%s1883_s10 + $0x20] sm:$0xff]   ;;  %v1582_v18 = vld [vmem:[%s1883_s10 + $0x28] sm:$0xff]   ;;  %s2207_s21 = smov 24   ;;  %s2211_s9 = smov 28   ;;  %v1602_v41 = vld [vmem:[%s1859_s7 + $0x38] sm:$0xff]  }
  0x2a   : > { %527 = vrot.lane.b32.xlu1 %v1568_v4, %s2204_s29  ;;  %519 = vrot.lane.b32.xlu0 %v1569_v5, %s2204_s29  ;;  %v1581_v17 = vld [vmem:[%s1883_s10] sm:$0xff]   ;;  %v1583_v19 = vld [vmem:[%s1883_s10 + $0x8] sm:$0xff]  }
  0x2b   : > { %v1584_v20 = vld [vmem:[%s1891_s28 + $0x20] sm:$0xff]   ;;  %v1586_v22 = vld [vmem:[%s1891_s28 + $0x28] sm:$0xff]   ;;  %v1603_v42 = vld [vmem:[%s1859_s7 + $0x18] sm:$0xff]   ;;  %s2221_s7 = smov 20  }
  0x2c   : > { %v1585_v21 = vld [vmem:[%s1891_s28] sm:$0xff]   ;;  %v1587_v23 = vld [vmem:[%s1891_s28 + $0x8] sm:$0xff]   ;;  %v1604_v44 = vld [vmem:[%s1867_s11 + $0x30] sm:$0xff]  }
  0x2d   : > { %v1588_v24 = vld [vmem:[%s1899_s6 + $0x20] sm:$0xff]   ;;  %v1590_v26 = vld [vmem:[%s1899_s6 + $0x28] sm:$0xff]   ;;  %v1605_v45 = vld [vmem:[%s1867_s11 + $0x10] sm:$0xff]  }
  0x2e   : > { %529 = vrot.lane.b32.xlu1 %v1570_v6, %s2204_s29  ;;  %521 = vrot.lane.b32.xlu0 %v1571_v7, %s2204_s29  ;;  %s363_s29 = sshra.s32 %s1433_s8, 3  ;;  %v1589_v25 = vld [vmem:[%s1899_s6] sm:$0xff]   ;;  %v1591_v27 = vld [vmem:[%s1899_s6 + $0x8] sm:$0xff]   ;;  %s186_s8 = sshra.s32 %s1838_s4, 3 }
  0x2f   : > { %s1327_s20 = sshll.u32 %s363_s29, 2  ;;  %s2209_s29 = smov 20   ;;  %v1606_v46 = vld [vmem:[%s1867_s11 + $0x38] sm:$0xff]   ;;  %v1608_v48 = vld [vmem:[%s1875_s5 + $0x30] sm:$0xff]  }
  0x30   : > { %s1906_s0 = scalar_lea.vmem %s1846_s24, %s1327_s20  ;;  %s1310_s20 = sshll.u32 %s186_s8, 2  ;;  %v1607_v47 = vld [vmem:[%s1867_s11 + $0x18] sm:$0xff]   ;;  %v1609_v49 = vld [vmem:[%s1875_s5 + $0x10] sm:$0xff]  }
  0x31   : > { %v1592_v28 = vld [vmem:[%s1906_s0 + $0x20] sm:$0xff]   ;;  %s2219_s4 = smov 4   ;;  %v1596_v32 = vld [vmem:[%s1906_s0 + $0x28] sm:$0xff]   ;;  %v1610_v50 = vld [vmem:[%s1875_s5 + $0x38] sm:$0xff]   ;;  %s175_s11 = sand.u32 1, %s1709_s13  }
  0x32   : > { %583 = vrot.lane.b32.xlu1 %v1572_v8, %s1737_s23  ;;  %575 = vrot.lane.b32.xlu0 %v1573_v9, %s1737_s23  ;;  %v1593_v29 = vld [vmem:[%s1906_s0] sm:$0xff]   ;;  %v1597_v33 = vld [vmem:[%s1906_s0 + $0x8] sm:$0xff]   ;;  %s2144_s27 = scalar_lea.sflag [#allocation3], %s175_s11 }
  0x33   : > { %v1611_v51 = vld [vmem:[%s1875_s5 + $0x18] sm:$0xff]   ;;  %v1612_v52 = vld [vmem:[%s1883_s10 + $0x30] sm:$0xff]  }
  0x34   : > { %v1613_v53 = vld [vmem:[%s1883_s10 + $0x10] sm:$0xff]   ;;  %v1614_v54 = vld [vmem:[%s1883_s10 + $0x38] sm:$0xff]  }
  0x35   : > { %v1615_v55 = vld [vmem:[%s1883_s10 + $0x18] sm:$0xff]   ;;  %v1616_v56 = vld [vmem:[%s1891_s28 + $0x30] sm:$0xff]  }
  0x36   : > { %585 = vrot.lane.b32.xlu1 %v1574_v10, %s1737_s23  ;;  %577 = vrot.lane.b32.xlu0 %v1575_v11, %s1737_s23  ;;  %v1617_v57 = vld [vmem:[%s1891_s28 + $0x10] sm:$0xff]   ;;  %v1618_v58 = vld [vmem:[%s1891_s28 + $0x38] sm:$0xff]  }
  0x37   : > { %v1619_v59 = vld [vmem:[%s1891_s28 + $0x18] sm:$0xff]   ;;  %v1620_v60 = vld [vmem:[%s1899_s6 + $0x30] sm:$0xff]   ;;  %s1307_s28 = sshll.u32 %s175_s11, 7 }
  0x38   : > { %v1621_v61 = vld [vmem:[%s1899_s6 + $0x10] sm:$0xff]   ;;  %v1624_v62 = vld [vmem:[%s1899_s6 + $0x38] sm:$0xff]  }
  0x39   : > { %v1625_v63 = vld [vmem:[%s1899_s6 + $0x18] sm:$0xff]   ;;  %v1628_v2 = vld [vmem:[%s1906_s0 + $0x30] sm:$0xff]   ;;  %s2111_s6 = scalar_lea.vmem [#allocation2], %s1307_s28 }
  0x3a   : > { %639 = vrot.lane.b32.xlu1 %v1576_v12, %s1738_s22  ;;  %631 = vrot.lane.b32.xlu0 %v1577_v13, %s1738_s22  ;;  %v1629_v3 = vld [vmem:[%s1906_s0 + $0x10] sm:$0xff]   ;;  %v1630_v6 = vld [vmem:[%s1906_s0 + $0x38] sm:$0xff]  }
  0x3b   : > { %v1631_v7 = vld [vmem:[%s1906_s0 + $0x18] sm:$0xff]   ;;  %s1413_s0 = sshll.u32 %s1717_s15, 4 }
  0x3e   : > { %641 = vrot.lane.b32.xlu1 %v1578_v14, %s1738_s22  ;;  %633 = vrot.lane.b32.xlu0 %v1579_v15, %s1738_s22 }
  0x42   : > { %695 = vrot.lane.b32.xlu1 %v1580_v16, %s2209_s29  ;;  %687 = vrot.lane.b32.xlu0 %v1581_v17, %s2209_s29 }
  0x46   : > { %697 = vrot.lane.b32.xlu1 %v1582_v18, %s2209_s29  ;;  %689 = vrot.lane.b32.xlu0 %v1583_v19, %s2209_s29  ;;  %s1742_s29 = smov 32  }
  0x4a   : > { %751 = vrot.lane.b32.xlu1 %v1584_v20, %s2207_s21  ;;  %743 = vrot.lane.b32.xlu0 %v1585_v21, %s2207_s21 }
  0x4e   : > { %753 = vrot.lane.b32.xlu1 %v1586_v22, %s2207_s21  ;;  %745 = vrot.lane.b32.xlu0 %v1587_v23, %s2207_s21  ;;  %s1938_s21 = scalar_lea.vmem %s1846_s24, %s1310_s20 }
  0x52   : > { %807 = vrot.lane.b32.xlu1 %v1588_v24, %s2211_s9  ;;  %799 = vrot.lane.b32.xlu0 %v1589_v25, %s2211_s9 }
  0x56   : > { %809 = vrot.lane.b32.xlu1 %v1590_v26, %s2211_s9  ;;  %801 = vrot.lane.b32.xlu0 %v1591_v27, %s2211_s9  ;;  %s2220_s9 = smov 8  }
  0x5a   : > { %863 = vrot.lane.b32.xlu1 %v1592_v28, %s1742_s29  ;;  %855 = vrot.lane.b32.xlu0 %v1593_v29, %s1742_s29  ;;  %v1627_v28 = vld [vmem:[%s1938_s21 + $0x20] sm:$0xff]  }
  0x5b   : > { %v1623_v29 = vld [vmem:[%s1938_s21] sm:$0xff]  }
  0x5e   : > { %475 = vrot.lane.b32.xlu1 %v1594_v30, %s2219_s4  ;;  %467 = vrot.lane.b32.xlu0 %v1595_v31, %s2219_s4 }
  0x62   : > { %865 = vrot.lane.b32.xlu1 %v1596_v32, %s1742_s29  ;;  %857 = vrot.lane.b32.xlu0 %v1597_v33, %s1742_s29 }
  0x66   : > { %477 = vrot.lane.b32.xlu1 %v1598_v34, %s2219_s4  ;;  %469 = vrot.lane.b32.xlu0 %v1599_v35, %s2219_s4 }
  0x6a   : > { %531 = vrot.lane.b32.xlu1 %v1600_v38, %s2220_s9  ;;  %523 = vrot.lane.b32.xlu0 %v1601_v39, %s2220_s9 }
  0x6e   : > { %533 = vrot.lane.b32.xlu1 %v1602_v41, %s2220_s9  ;;  %525 = vrot.lane.b32.xlu0 %v1603_v42, %s2220_s9  ;;  %v1626_v41 = vld [vmem:[%s1938_s21 + $0x28] sm:$0xff]  }
  0x72   : > { %587 = vrot.lane.b32.xlu1 %v1604_v44, %s1737_s23  ;;  %579 = vrot.lane.b32.xlu0 %v1605_v45, %s1737_s23  ;;  %v1622_v44 = vld [vmem:[%s1938_s21 + $0x8] sm:$0xff]  }
  0x76   : > { %589 = vrot.lane.b32.xlu1 %v1606_v46, %s1737_s23  ;;  %581 = vrot.lane.b32.xlu0 %v1607_v47, %s1737_s23  ;;  %s2222_s23 = smov 24  }
  0x7a   : > { %643 = vrot.lane.b32.xlu1 %v1608_v48, %s1738_s22  ;;  %635 = vrot.lane.b32.xlu0 %v1609_v49, %s1738_s22 }
  0x7e   : > { %645 = vrot.lane.b32.xlu1 %v1610_v50, %s1738_s22  ;;  %637 = vrot.lane.b32.xlu0 %v1611_v51, %s1738_s22  ;;  %s2223_s22 = smov 28  }
  0x82   : > { %699 = vrot.lane.b32.xlu1 %v1612_v52, %s2221_s7  ;;  %691 = vrot.lane.b32.xlu0 %v1613_v53, %s2221_s7 }
  0x86   : > { %701 = vrot.lane.b32.xlu1 %v1614_v54, %s2221_s7  ;;  %693 = vrot.lane.b32.xlu0 %v1615_v55, %s2221_s7  ;;  %s1743_s7 = smov [#allocation2]  }
  0x8a   : > { %755 = vrot.lane.b32.xlu1 %v1616_v56, %s2222_s23  ;;  %747 = vrot.lane.b32.xlu0 %v1617_v57, %s2222_s23 }
  0x8e   : > { %757 = vrot.lane.b32.xlu1 %v1618_v58, %s2222_s23  ;;  %749 = vrot.lane.b32.xlu0 %v1619_v59, %s2222_s23  ;;  %s1643_s23 = sshll.u32 %s1743_s7, 4  ;;  %s1644_s23 = int_to_ptr.vmem [resolvable:$false] %s1643_s23 }
  0x92   : > { %811 = vrot.lane.b32.xlu1 %v1620_v60, %s2223_s22  ;;  %803 = vrot.lane.b32.xlu0 %v1621_v61, %s2223_s22 }
  0x94   : > { %v2009_v0 = vpop.permute.xlu1 %465  ;;  %v464_v1 = vpop.permute.xlu0 %463 }
  0x95   : > { %v874_v33 = vsel %vm871_vm1, %v1623_v29, %v464_v1  ;;  %v877_v55 = vsel %vm871_vm1, %v1622_v44, %v2009_v0 }
  0x96   : > { %813 = vrot.lane.b32.xlu1 %v1624_v62, %s2223_s22  ;;  %805 = vrot.lane.b32.xlu0 %v1625_v63, %s2223_s22  ;;  %s1645_s22 = scalar_lea.vmem %s1644_s23, 4096 }
  0x98   : > { %v2015_v4 = vpop.permute.xlu1 %473  ;;  %v472_v5 = vpop.permute.xlu0 %471 }
  0x99   : > { %v886_v32 = vsel %vm871_vm1, %v1627_v28, %v472_v5  ;;  %v889_v53 = vsel %vm871_vm1, %v1626_v41, %v2015_v4 }
  0x9a   : > { %867 = vrot.lane.b32.xlu1 %v1628_v2, %s1742_s29  ;;  %859 = vrot.lane.b32.xlu0 %v1629_v3, %s1742_s29 }
  0x9c   : > { %v528_v8 = vpop.permute.xlu1 %527  ;;  %v520_v9 = vpop.permute.xlu0 %519 }
  0x9d   : > { %v906_v34 = vsel %vm896_vm2, %v886_v32, %v528_v8  ;;  %v898_v35 = vsel %vm896_vm2, %v874_v33, %v520_v9  ;;  %v1634_v32 = vld [vmem:[%s1938_s21 + $0x30] sm:$0xff]  }
  0x9e   : > { %869 = vrot.lane.b32.xlu1 %v1630_v6, %s1742_s29  ;;  %861 = vrot.lane.b32.xlu0 %v1631_v7, %s1742_s29  ;;  %v1635_v33 = vld [vmem:[%s1938_s21 + $0x10] sm:$0xff]   ;;  %s1414_s29 = sshll.u32 %s1721_s16, 5  ;;  %s1208_s16 = sshll.u32 %s2111_s6, 4  ;;  %s2137_s16 = int_to_ptr.vmem [resolvable:$true] %s1208_s16 }
  0x9f   : > { %s1639_s24 = scalar_lea.vmem %s2137_s16, 2048  ;;  %p1646_p2 = scmp.lt.s32.totalorder %s2137_s16, %s1644_s23 }
  0xa0   : > { %v530_v10 = vpop.permute.xlu1 %529  ;;  %v522_v11 = vpop.permute.xlu0 %521  ;;  %p1640_p13 = scmp.ne.s32.totalorder %s2137_s16, %s1639_s24  ;;  %p1647_p4 = scmp.lt.s32.totalorder %s1645_s22, %s1639_s24 }
  0xa1   : > { %v908_v56 = vsel %vm896_vm2, %v889_v53, %v530_v10  ;;  %v900_v57 = vsel %vm896_vm2, %v877_v55, %v522_v11 }
  0xa2   : > { %p1641_p0 = pnand %p1640_p13, %p1816_p3  ;;  %p1648_p5 = por %p1647_p4, %p1646_p2 }
  0xa4   : > { %v584_v12 = vpop.permute.xlu1 %583  ;;  %v576_v13 = vpop.permute.xlu0 %575  ;;  %p1642_p1 = pneg %p1641_p0 }
  0xa5   : > { %v923_v36 = vsel %vm913_vm3, %v906_v34, %v584_v12  ;;  %v915_v38 = vsel %vm913_vm3, %v898_v35, %v576_v13 }
  0xa6   : > { %p1649_p6 = pnand %p1648_p5, %p1642_p1 }
  0xa8   : > { %v586_v14 = vpop.permute.xlu1 %585  ;;  %v578_v15 = vpop.permute.xlu0 %577 }
  0xa9   : > { %v925_v58 = vsel %vm913_vm3, %v908_v56, %v586_v14  ;;  %v917_v60 = vsel %vm913_vm3, %v900_v57, %v578_v15 }
  0xac   : > { %v640_v16 = vpop.permute.xlu1 %639  ;;  %v632_v17 = vpop.permute.xlu0 %631 }
  0xad   : > { %v940_v39 = vsel %vm930_vm4, %v923_v36, %v640_v16  ;;  %v932_v42 = vsel %vm930_vm4, %v915_v38, %v632_v17 }
  0xb0   : > { %v642_v18 = vpop.permute.xlu1 %641  ;;  %v634_v19 = vpop.permute.xlu0 %633 }
  0xb1   : > { %v942_v61 = vsel %vm930_vm4, %v925_v58, %v642_v18  ;;  %v934_v63 = vsel %vm930_vm4, %v917_v60, %v634_v19 }
  0xb4   : > { %v696_v20 = vpop.permute.xlu1 %695  ;;  %v688_v21 = vpop.permute.xlu0 %687 }
  0xb5   : > { %v957_v43 = vsel %vm947_vm5, %v940_v39, %v696_v20  ;;  %v949_v45 = vsel %vm947_vm5, %v932_v42, %v688_v21  ;;  %v1638_v39 = vld [vmem:[%s1938_s21 + $0x18] sm:$0xff]  }
  0xb8   : > { %v698_v22 = vpop.permute.xlu1 %697  ;;  %v690_v23 = vpop.permute.xlu0 %689 }
  0xb9   : > { %v959_v1 = vsel %vm947_vm5, %v942_v61, %v698_v22  ;;  %v951_v0 = vsel %vm947_vm5, %v934_v63, %v690_v23 }
  0xbc   : > { %v752_v24 = vpop.permute.xlu1 %751  ;;  %v744_v25 = vpop.permute.xlu0 %743 }
  0xbd   : > { %v974_v46 = vsel %vm964_vm6, %v957_v43, %v752_v24  ;;  %v966_v47 = vsel %vm964_vm6, %v949_v45, %v744_v25 }
  0xc0   : > { %v754_v26 = vpop.permute.xlu1 %753  ;;  %v746_v27 = vpop.permute.xlu0 %745 }
  0xc1   : > { %v976_v2 = vsel %vm964_vm6, %v959_v1, %v754_v26  ;;  %v968_v3 = vsel %vm964_vm6, %v951_v0, %v746_v27 }
  0xc4   : > { %v808_v30 = vpop.permute.xlu1 %807  ;;  %v800_v31 = vpop.permute.xlu0 %799 }
  0xc5   : > { %v991_v48 = vsel %vm981_vm7, %v974_v46, %v808_v30  ;;  %v983_v50 = vsel %vm981_vm7, %v966_v47, %v800_v31 }
  0xc8   : > { %v810_v37 = vpop.permute.xlu1 %809  ;;  %v802_v40 = vpop.permute.xlu0 %801 }
  0xc9   : > { %v993_v4 = vsel %vm981_vm7, %v976_v2, %v810_v37  ;;  %v985_v6 = vsel %vm981_vm7, %v968_v3, %v802_v40  ;;  %v1637_v37 = vld [vmem:[%s1938_s21 + $0x38] sm:$0xff]   ;;  %s2123_s21 = sadd.s32 %s1414_s29, %s1413_s0 }
  0xca   : > { %s1415_s15 = sshll.u32 %s2123_s21, 7 }
  0xcb   : > { %s2133_s20 = scalar_lea.hbm %s2200_s3, %s1415_s15 }
  0xcc   : > { %v864_v49 = vpop.permute.xlu1 %863  ;;  %v856_v51 = vpop.permute.xlu0 %855 }
  0xcd   : > { %v1008_v52 = vsel %vm998_vm8, %v991_v48, %v864_v49  ;;  %v1000_v54 = vsel %vm998_vm8, %v983_v50, %v856_v51 }
  0xce   : > { %1467 = vmatprep.mubr.msk.bf16.mxu1 %vm1042_vm9, %v1008_v52  ;;  %1459 = vmatprep.mubr.msk.bf16.mxu0 %vm1042_vm9, %v1000_v54 }
  0xd0   : > { %v476_v59 = vpop.permute.xlu1 %475  ;;  %v468_v62 = vpop.permute.xlu0 %467 }
  0xd1   : > { %v892_v36 = vsel %vm871_vm1, %v1634_v32, %v476_v59  ;;  %v880_v38 = vsel %vm871_vm1, %v1635_v33, %v468_v62 }
  0xd4   : > { %v866_v5 = vpop.permute.xlu1 %865  ;;  %v858_v8 = vpop.permute.xlu0 %857 }
  0xd5   : > { %v1010_v7 = vsel %vm998_vm8, %v993_v4, %v866_v5  ;;  %v1002_v9 = vsel %vm998_vm8, %v985_v6, %v858_v8 }
  0xd6   : > { %1468 = vmatmul.mubr.msk.bf16.vlgmr.msra.gmra.mrb[0].mxu1 %vm1042_vm9, %v1010_v7  ;;  %1460 = vmatmul.mubr.msk.bf16.vlgmr.msra.gmra.mrb[0].mxu0 %vm1042_vm9, %v1002_v9 }
  0xd8   : > { %v478_v10 = vpop.permute.xlu1 %477  ;;  %v470_v11 = vpop.permute.xlu0 %469 }
  0xd9   : > { %v895_v47 = vsel %vm871_vm1, %v1637_v37, %v478_v10  ;;  %v883_v50 = vsel %vm871_vm1, %v1638_v39, %v470_v11 }
  0xdc   : > { %v532_v12 = vpop.permute.xlu1 %531  ;;  %v524_v13 = vpop.permute.xlu0 %523 }
  0xdd   : > { %v910_v40 = vsel %vm896_vm2, %v892_v36, %v532_v12  ;;  %v902_v41 = vsel %vm896_vm2, %v880_v38, %v524_v13  ;;  %v1400_v12 = vld [vmem:[%s2199_s2] ss:$0 sm:$0xff] }
  0xe0   : > { %v534_v14 = vpop.permute.xlu1 %533  ;;  %v526_v15 = vpop.permute.xlu0 %525 }
  0xe1   : > { %v912_v51 = vsel %vm896_vm2, %v895_v47, %v534_v14  ;;  %v904_v54 = vsel %vm896_vm2, %v883_v50, %v526_v15 }
  0xe4   : > { %v588_v16 = vpop.permute.xlu1 %587  ;;  %v580_v17 = vpop.permute.xlu0 %579 }
  0xe5   : > { %v927_v42 = vsel %vm913_vm3, %v910_v40, %v588_v16  ;;  %v919_v44 = vsel %vm913_vm3, %v902_v41, %v580_v17 }
  0xe8   : > { %v590_v18 = vpop.permute.xlu1 %589  ;;  %v582_v19 = vpop.permute.xlu0 %581 }
  0xe9   : > { %v929_v55 = vsel %vm913_vm3, %v912_v51, %v590_v18  ;;  %v921_v59 = vsel %vm913_vm3, %v904_v54, %v582_v19 }
  0xec   : > { %v644_v20 = vpop.permute.xlu1 %643  ;;  %v636_v21 = vpop.permute.xlu0 %635 }
  0xed   : > { %v944_v45 = vsel %vm930_vm4, %v927_v42, %v644_v20  ;;  %v936_v48 = vsel %vm930_vm4, %v919_v44, %v636_v21 }
  0xf0   : > { %v646_v22 = vpop.permute.xlu1 %645  ;;  %v638_v23 = vpop.permute.xlu0 %637 }
  0xf1   : > { %v946_v60 = vsel %vm930_vm4, %v929_v55, %v646_v22  ;;  %v938_v1 = vsel %vm930_vm4, %v921_v59, %v638_v23 }
  0xf4   : > { %v700_v24 = vpop.permute.xlu1 %699  ;;  %v692_v25 = vpop.permute.xlu0 %691 }
  0xf5   : > { %v961_v49 = vsel %vm947_vm5, %v944_v45, %v700_v24  ;;  %v953_v52 = vsel %vm947_vm5, %v936_v48, %v692_v25 }
  0xf8   : > { %v702_v26 = vpop.permute.xlu1 %701  ;;  %v694_v27 = vpop.permute.xlu0 %693 }
  0xf9   : > { %v963_v0 = vsel %vm947_vm5, %v946_v60, %v702_v26  ;;  %v955_v3 = vsel %vm947_vm5, %v938_v1, %v694_v27 }
  0xfc   : > { %v756_v28 = vpop.permute.xlu1 %755  ;;  %v748_v29 = vpop.permute.xlu0 %747 }
  0xfd   : > { %v978_v53 = vsel %vm964_vm6, %v961_v49, %v756_v28  ;;  %v970_v56 = vsel %vm964_vm6, %v953_v52, %v748_v29 }
 0x100   : > { %v758_v30 = vpop.permute.xlu1 %757  ;;  %v750_v31 = vpop.permute.xlu0 %749 }
 0x101   : > { %v980_v4 = vsel %vm964_vm6, %v963_v0, %v758_v30  ;;  %v972_v5 = vsel %vm964_vm6, %v955_v3, %v750_v31 }
 0x104   : > { %v812_v34 = vpop.permute.xlu1 %811  ;;  %v804_v35 = vpop.permute.xlu0 %803 }
 0x105   : > { %v995_v57 = vsel %vm981_vm7, %v978_v53, %v812_v34  ;;  %v987_v61 = vsel %vm981_vm7, %v970_v56, %v804_v35 }
 0x108   : > { %v814_v43 = vpop.permute.xlu1 %813  ;;  %v806_v46 = vpop.permute.xlu0 %805 }
 0x109   : > { %v997_v6 = vsel %vm981_vm7, %v980_v4, %v814_v43  ;;  %v989_v8 = vsel %vm981_vm7, %v972_v5, %v806_v46 }
 0x10c   : > { %v868_v58 = vpop.permute.xlu1 %867  ;;  %v860_v63 = vpop.permute.xlu0 %859 }
 0x10d   : > { %v1012_v62 = vsel %vm998_vm8, %v995_v57, %v868_v58  ;;  %v1004_v2 = vsel %vm998_vm8, %v987_v61, %v860_v63 }
 0x10e   : > { %1471 = vmatprep.mubr.msk.bf16.mxu1 %vm1042_vm9, %v1012_v62  ;;  %1463 = vmatprep.mubr.msk.bf16.mxu0 %vm1042_vm9, %v1004_v2 }
 0x110   : > { %v870_v7 = vpop.permute.xlu1 %869  ;;  %v862_v10 = vpop.permute.xlu0 %861 }
 0x111   : > { %v1014_v9 = vsel %vm998_vm8, %v997_v6, %v870_v7  ;;  %v1006_v11 = vsel %vm998_vm8, %v989_v8, %v862_v10 }
 0x112   : > { %1472 = vmatmul.mubr.msk.bf16.gmra.mrb[4].mxu1 %vm1042_vm9, %v1014_v9  ;;  %1464 = vmatmul.mubr.msk.bf16.gmra.mrb[4].mxu0 %vm1042_vm9, %v1006_v11 }
 0x1a9   : > { %v1469_v13 = vpop.f32.mrb[0].mxu1  ;;  %v1461_v14 = vpop.f32.mrb[0].mxu0 }
 0x1aa   : > { %v1138_v15 = vadd.f32 %v1469_v13, %v1400_v12  ;;  %v1129_v16 = vpop.f32.mrb[1].mxu1  ;;  %v1106_v17 = vadd.f32 %v1461_v14, %v1400_v12  ;;  %v1097_v18 = vpop.f32.mrb[1].mxu0 }
 0x1ab   : > { %v1130_v19 = vadd.f32 %v1400_v12, %v1129_v16  ;;  %v1470_v20 = vpop.f32.mrb[2].mxu1  ;;  %v1098_v22 = vadd.f32 %v1400_v12, %v1097_v18  ;;  %v1462_v23 = vpop.f32.mrb[2].mxu0 }
 0x1ac   : > { %v1170_v21 = vmax.f32 %v1138_v15, 0.0  ;;  %v1141_v24 = vadd.f32 %v1470_v20, %v1400_v12  ;;  %v1132_v25 = vpop.f32.mrb[3].mxu1  ;;  %v1162_v26 = vmax.f32 %v1106_v17, 0.0  ;;  %v1109_v28 = vadd.f32 %v1462_v23, %v1400_v12  ;;  %v1100_v29 = vpop.f32.mrb[3].mxu0 }
 0x1ad   : > { %v1168_v27 = vmax.f32 %v1130_v19, 0.0  ;;  %v1133_v30 = vadd.f32 %v1400_v12, %v1132_v25  ;;  %v1160_v31 = vmax.f32 %v1098_v22, 0.0  ;;  %v1101_v33 = vadd.f32 %v1400_v12, %v1100_v29 }
 0x1ae   : > { %1186 = vst [vmem:[%s2111_s6 + $0x50] sm:$0xff] %v1170_v21  ;;  %v1171_v32 = vmax.f32 %v1141_v24, 0.0  ;;  %1178 = vst [vmem:[%s2111_s6 + $0x10] sm:$0xff] %v1162_v26  ;;  %v1163_v34 = vmax.f32 %v1109_v28, 0.0 }
 0x1af   : > { %1184 = vst [vmem:[%s2111_s6 + $0x40] sm:$0xff] %v1168_v27  ;;  %v1169_v35 = vmax.f32 %v1133_v30, 0.0  ;;  %1176 = vst [vmem:[%s2111_s6] sm:$0xff] %v1160_v31  ;;  %v1161_v36 = vmax.f32 %v1101_v33, 0.0 }
 0x1b0   : > { %1187 = vst [vmem:[%s2111_s6 + $0x58] sm:$0xff] %v1171_v32  ;;  %1179 = vst [vmem:[%s2111_s6 + $0x18] sm:$0xff] %v1163_v34 }
 0x1b1   : > { %1185 = vst [vmem:[%s2111_s6 + $0x48] sm:$0xff] %v1169_v35  ;;  %1177 = vst [vmem:[%s2111_s6 + $0x8] sm:$0xff] %v1161_v36 }
 0x1e5   : > { %v1473_v37 = vpop.f32.mrb[4].mxu1  ;;  %v1465_v38 = vpop.f32.mrb[4].mxu0 }
 0x1e6   : > { %v1154_v39 = vadd.f32 %v1473_v37, %v1400_v12  ;;  %v1145_v40 = vpop.f32.mrb[5].mxu1  ;;  %v1122_v41 = vadd.f32 %v1465_v38, %v1400_v12  ;;  %v1113_v42 = vpop.f32.mrb[5].mxu0 }
 0x1e7   : > { %v1146_v43 = vadd.f32 %v1400_v12, %v1145_v40  ;;  %v1474_v44 = vpop.f32.mrb[6].mxu1  ;;  %v1114_v46 = vadd.f32 %v1400_v12, %v1113_v42  ;;  %v1466_v47 = vpop.f32.mrb[6].mxu0 }
 0x1e8   : > { %v1174_v45 = vmax.f32 %v1154_v39, 0.0  ;;  %v1157_v48 = vadd.f32 %v1474_v44, %v1400_v12  ;;  %v1148_v49 = vpop.f32.mrb[7].mxu1  ;;  %v1166_v50 = vmax.f32 %v1122_v41, 0.0  ;;  %v1125_v52 = vadd.f32 %v1466_v47, %v1400_v12  ;;  %v1116_v53 = vpop.f32.mrb[7].mxu0 }
 0x1e9   : > { %v1172_v51 = vmax.f32 %v1146_v43, 0.0  ;;  %v1149_v54 = vadd.f32 %v1400_v12, %v1148_v49  ;;  %v1164_v55 = vmax.f32 %v1114_v46, 0.0  ;;  %v1117_v57 = vadd.f32 %v1400_v12, %v1116_v53 }
 0x1ea   : > { %1190 = vst [vmem:[%s2111_s6 + $0x70] sm:$0xff] %v1174_v45  ;;  %v1175_v56 = vmax.f32 %v1157_v48, 0.0  ;;  %1182 = vst [vmem:[%s2111_s6 + $0x30] sm:$0xff] %v1166_v50  ;;  %v1167_v58 = vmax.f32 %v1125_v52, 0.0 }
 0x1eb   : > { %1188 = vst [vmem:[%s2111_s6 + $0x60] sm:$0xff] %v1172_v51  ;;  %v1173_v59 = vmax.f32 %v1149_v54, 0.0  ;;  %1180 = vst [vmem:[%s2111_s6 + $0x20] sm:$0xff] %v1164_v55  ;;  %v1165_v60 = vmax.f32 %v1117_v57, 0.0 }
 0x1ec   : > { %1191 = vst [vmem:[%s2111_s6 + $0x78] sm:$0xff] %v1175_v56  ;;  %1183 = vst [vmem:[%s2111_s6 + $0x38] sm:$0xff] %v1167_v58 }
 0x1ed   : > { %1189 = vst [vmem:[%s2111_s6 + $0x68] sm:$0xff] %v1173_v59  ;;  %1181 = vst [vmem:[%s2111_s6 + $0x28] sm:$0xff] %v1165_v60 }
 0x1ee   : > { %1652 = shalt.err (!%p1649_p6)
}
 0x1ef   : > { %s1653_s11 = scalar_lea.hbm %s2133_s20, 2048  ;;  %s1657_s28 = scalar_lea.hbm %s2200_s3, 8192 }
 0x1f0   : > { %p1654_p7 = scmp.ne.s32.totalorder %s2133_s20, %s1653_s11  ;;  %p1658_p11 = scmp.lt.u32.totalorder %s2133_s20, %s2200_s3 }
 0x1f1   : > { %p1659_p12 = scmp.lt.u32.totalorder %s1657_s28, %s1653_s11  ;;  %p1661_p0 = scmp.lt.u32.totalorder %s1653_s11, %s2133_s20 }
 0x1f2   : > { %p1655_p9 = pnand %p1654_p7, %p1816_p3 }
 0x1f3   : > { %p1660_p13 = por %p1659_p12, %p1658_p11 }
 0x1f4   : > { %p1656_p10 = pneg %p1655_p9 }
 0x1f5   : > { %p1662_p1 = por %p1661_p0, %p1660_p13 }
 0x1f7   : > { %p1663_p2 = pnand %p1662_p1, %p1656_p10 }
 0x1f9   : > { %1666 = shalt.err (!%p1663_p2)
}
 0x1fa   : > { %s1744_s29 = smov 128  }
 0x1fb   : > { %1484 = dma.vmem_to_hbm [thread:$0]  (%p1816_p3), %s2137_s16, 2048, %s2133_s20, %s2144_s27, %s1744_s29, %s1744_s29, %s2220_s9  }
 0x1fc PF: > { %p1490_p4 = scmp.ge.s32.totalorder %s1733_s19, 2  ;;  %s1223_s21 = sand.u32 1, %s1705_s12  }
 0x1fd   : > { %s1224_s15 = scalar_lea.sflag [#allocation3], %s1223_s21 }
 0x1fe   : > { %p1487_p5 = pnand %p1490_p4, %p1825_p8 }
 0x200   : > { %1700 = dma.done.wait (!%p1487_p5), %s1224_s15, 2048  }
 0x201   : > { %1702 = vsyncadd (!%p1487_p5), %s1224_s15, 4294965248  ;;  %s16_s19 = sadd.s32 1, %s1733_s19   ;;  %s2224_s25 = sld [smem:[#allocation5_spill]] }
 0x202   : > { %p13_p6 = scmp.ge.s32.totalorder %s16_s19, 6   ;;  %s2225_s9 = sld [smem:[#allocation6_spill]] }
 0x203   : > { %s2226_s12 = smov %s1709_s13  ;;  %s2227_s13 = smov %s1713_s14 }
 0x204   : > { %s2228_s14 = smov %s1834_s30  ;;  %s2229_s15 = smov %s1725_s17 }
 0x205   : > { %s2230_s16 = smov %s1729_s18  ;;  %15 = sbr.rel (!%p13_p6) target bundleno = 7 (0x7), region = 76 }
 0x207   : > { %s2231_s17 = smov %s2224_s25 }
 0x208   : > { %s2232_s18 = smov %s2225_s9 }
 0x20c   :  { %1229 = vsyncpa [#allocation3], 1 }
 0x20d   :  { %1231 = vsyncpa [#allocation3 + $0x1], 1 }

// kernel: tpu_custom_call.1
= control target key start
LH: loop header
LB: loop body
LE: loop exit
PB: predicated region body
PF: predicated region fallthrough
CT: control target
= control target key end

     0   :  { %8 = vsyncpa [#allocation3], 0  ;;  %s3386_s0 = inlined_call_operand.vmem [shape: bf16[2,384,4], index: 0, kind: input, shape index: {}]   ;;  %s3387_s1 = inlined_call_operand.vmem [shape: bf16[9,4,128], index: 1, kind: input, shape index: {}]   ;;  %s3388_s2 = inlined_call_operand.vmem [shape: f32[1,128], index: 2, kind: input, shape index: {}]   ;;  %s3389_s3 = inlined_call_operand.hbm [shape: f32[2,256,128], index: 3, kind: output, shape index: {}]  }
   0x1   :  { %10 = vsyncpa [#allocation3 + $0x1], 0  ;;  %s2964_s12 = smov 0   ;;  %s2966_s13 = smov 0  }
   0x2   :  { %s2968_s14 = smov 0   ;;  %s2970_s15 = smov 0  }
   0x3   :  { %s2972_s16 = smov 0   ;;  %s2974_s17 = smov 0  }
   0x4   :  { %s2976_s18 = smov 0   ;;  %s2978_s19 = smov 0  }
   0x5 LB: > { %s2107_s20 = sadd.s32 4294967295, %s2939_s19   ;;  %s2108_s21 = sadd.s32 4294967294, %s2939_s19   ;;  %s2939_s19 = sphi %s2978_s19, %s16_s19   ;;  %s2935_s18 = sphi %s2976_s18, %s3398_s18   ;;  %s2931_s17 = sphi %s2974_s17, %s3397_s17   ;;  %s2927_s16 = sphi %s2972_s16, %s3396_s16   ;;  %s2923_s15 = sphi %s2970_s15, %s3395_s15   ;;  %s2919_s14 = sphi %s2968_s14, %s3394_s14   ;;  %s2915_s13 = sphi %s2966_s13, %s3393_s13   ;;  %s2911_s12 = sphi %s2964_s12, %s3392_s12  }
   0x6   : > { %s25_s22 = sadd.s32 1, %s2931_s17  ;;  %s28_s23 = sadd.s32 1, %s2935_s18 }
   0x7   : > { %p26_p0 = scmp.ge.s32.totalorder %s25_s22, 2  ;;  %p115_p1 = scmp.ne.s32.totalorder %s2919_s14, %s2915_s13 }
   0x8   : > { %p116_p2 = scmp.eq.s32.totalorder %s2107_s20, 3  ;;  %p121_p5 = scmp.ne.s32.totalorder %s2915_s13, %s2911_s12 }
   0x9   : > { %s3400_s22 = smov (%p26_p0, %s25_s22), 0  ;;  %s3402_s23 = smov (!%p26_p0, %s28_s23), %s2935_s18 }
   0xa   : > { %s101_s24 = ssub.s32 %s2931_s17, %s3400_s22  ;;  %p3015_p3 = por %p116_p2, %p115_p1 }
   0xb   : > { %p30_p4 = scmp.ge.s32.totalorder %s3402_s23, 2  ;;  %p122_p6 = scmp.eq.s32.totalorder %s2108_s21, 3 }
   0xc   : > { %p2111_p7 = scmp.ge.s32.totalorder %s2939_s19, 1  ;;  %p154_p9 = scmp.lt.s32.totalorder %s2939_s19, 5 }
   0xd   : > { %s3404_s23 = smov (%p30_p4, %s3402_s23), 0  ;;  %p3024_p8 = por %p122_p6, %p121_p5 }
   0xe   : > { %s100_s27 = ssub.s32 %s2935_s18, %s3404_s23  ;;  %s105_s28 = sadd.s32 1, %s2919_s14 }
   0xf   : > { %s102_s29 = sor.u32 %s101_s24, %s100_s27  ;;  %p155_p10 = pnand %p2111_p7, %p154_p9 }
  0x10   : > { %p103_p11 = scmp.eq.s32.totalorder %s102_s29, 0  ;;  %v2119_v0 = vld [vmem:[%s3387_s1 + $0x2] sm:$0x3] (!%p155_p10)  ;;  %vm297_vm0 = vcmask (!%p155_p10), 1041408   ;;  %v3041_v1 = vld [vmem:[%s3387_s1 + $0xa] sm:$0x3] (!%p155_p10) }
  0x11   : > { %158 = sbr.rel (%p155_p10) target bundleno = 405 (0x195), region = 32  ;;  %p178_p12 = scmp.lt.s32.totalorder (!%p155_p10), %s2927_s16, 1  ;;  %2689 = vmatprep.subr.msk.bf16.mxu1 (!%p155_p10), %vm297_vm0, %v2119_v0  ;;  %2693 = vmatprep.subr.msk.bf16.mxu0 (!%p155_p10), %vm297_vm0, %v3041_v1  ;;  %v299_v2 = vsel (!%p155_p10), %vm297_vm0, %v2119_v0, 0  ;;  %v3050_v3 = vsel (!%p155_p10), %vm297_vm0, %v3041_v1, 0  ;;  %v206_v4 = vld [vmem:[%s3387_s1] sm:$0x3] (!%p155_p10) }
  0x12   : > { %s3033_s30 = scalar_select %p103_p11, %s2919_s14, %s105_s28  }
  0x13   : > { %s3053_s8 = sshll.u32 (!%p155_p10), %s2923_s15, 7  ;;  %2398 = vmatpush3.bf16.msra.mxu1 (!%p155_p10), %v299_v2  ;;  %2470 = vmatpush3.bf16.msra.mxu0 (!%p155_p10), %v3050_v3  ;;  %v2192_v5 = vld [vmem:[%s3387_s1 + $0x8] sm:$0x3] (!%p155_p10)  ;;  %vm272_vm1 = vcmask (!%p155_p10), 31744   ;;  %v463_v9 = vsel (!%p155_p10), %vm297_vm0, %v206_v4, 0 }
  0x14   : > { %s2293_s24 = sadd.s32 (!%p155_p10), 16, %s3053_s8  ;;  %2690 = vmatprep.subr.msk.bf16.mxu1 (!%p155_p10), %vm297_vm0, %v206_v4  ;;  %s2301_s27 = sadd.s32 (!%p155_p10), 80, %s3053_s8  ;;  %2695 = vmatprep.subr.msk.bf16.mxu0 (!%p155_p10), %vm297_vm0, %v2192_v5  ;;  %v2233_v10 = vld [vmem:[%s3387_s1 + $0xe] sm:$0x3] (!%p155_p10)  ;;  %v1231_v12 = vsel (!%p155_p10), %vm297_vm0, %v2192_v5, 0 }
  0x15   : > { %s210_s29 = sshra.s32 (!%p155_p10), %s2293_s24, 3  ;;  %s980_s5 = sshra.s32 (!%p155_p10), %s2301_s27, 3  ;;  %v2157_v13 = vld [vmem:[%s3387_s1 + $0x6] sm:$0x3] (!%p155_p10)  ;;  %v1459_v24 = vsel (!%p155_p10), %vm297_vm0, %v2233_v10, 0 }
  0x16   : > { %s2118_s4 = sshll.u32 (!%p155_p10), %s210_s29, 2  ;;  %s2194_s10 = sshll.u32 (!%p155_p10), %s980_s5, 2  ;;  %v2230_v25 = vld [vmem:[%s3387_s1 + $0xc] sm:$0x3] (!%p155_p10)  ;;  %v675_v32 = vsel (!%p155_p10), %vm297_vm0, %v2157_v13, 0 }
  0x17   : > { %s186_s7 = sshra.s32 (!%p155_p10), %s3053_s8, 3  ;;  %v2154_v35 = vld [vmem:[%s3387_s1 + $0x4] sm:$0x3] (!%p155_p10)  ;;  %v1623_v44 = vsel (!%p155_p10), %vm297_vm0, %v2230_v25, 0  ;;  %v2268_v45 = vld [vmem:[%s3387_s1 + $0x10] sm:$0x3] (!%p155_p10) }
  0x18   : > { %s179_s11 = scalar_select %p178_p12, %s2927_s16, 1  ;;  %v839_v53 = vsel %vm297_vm0, %v2154_v35, 0  ;;  %v1827_v63 = vsel %vm297_vm0, %v2268_v45, 0 }
  0x1a   : > { %s2699_s28 = smul.u32 192, %s179_s11  ;;  %s2299_s11 = sadd.s32 64, %s3053_s8 }
  0x1b   : > { %s956_s24 = sshra.s32 %s2299_s11, 3 }
  0x1c   : > { %s3070_s9 = scalar_lea.vmem %s3386_s0, %s2699_s28  ;;  %s2191_s5 = sshll.u32 %s956_s24, 2 }
  0x1d   : > { %s3073_s20 = scalar_lea.vmem %s3070_s9, %s2118_s4  ;;  %s3076_s21 = scalar_lea.vmem %s3070_s9, %s2194_s10 }
  0x1e   : > { %v2773_v6 = vld [vmem:[%s3073_s20] sm:$0xff]   ;;  %v2775_v8 = vld [vmem:[%s3073_s20 + $0x8] sm:$0xff]   ;;  %v2777_v14 = vld [vmem:[%s3073_s20 + $0x10] sm:$0xff]   ;;  %s3101_s6 = scalar_lea.vmem %s3070_s9, %s2191_s5  ;;  %s2115_s10 = sshll.u32 %s186_s7, 2 }
  0x1f   : > { %v2774_v7 = vld [vmem:[%s3076_s21] sm:$0xff]   ;;  %2399 = vmatprep.mubr.msk.bf16.mxu1 %vm272_vm1, %v2773_v6  ;;  %v2776_v11 = vld [vmem:[%s3076_s21 + $0x8] sm:$0xff]   ;;  %v2778_v15 = vld [vmem:[%s3076_s21 + $0x10] sm:$0xff]   ;;  %s3115_s11 = scalar_lea.vmem %s3070_s9, %s2115_s10  ;;  %s2305_s24 = sadd.s32 112, %s3053_s8 }
  0x20   : > { %2471 = vmatprep.mubr.msk.bf16.mxu0 %vm272_vm1, %v2774_v7  ;;  %2400 = vmatmul.mubr.msk.bf16.vlgmr.msra.gmra.mrb[0].mxu1 %vm272_vm1, %v2775_v8  ;;  %v2779_v16 = vld [vmem:[%s3073_s20 + $0x18] sm:$0xff]   ;;  %v2781_v18 = vld [vmem:[%s3073_s20 + $0x20] sm:$0xff]   ;;  %v2783_v20 = vld [vmem:[%s3073_s20 + $0x28] sm:$0xff]   ;;  %s1372_s27 = sshra.s32 %s2305_s24, 3  ;;  %s2297_s5 = sadd.s32 48, %s3053_s8 }
  0x21   : > { %2416 = vmatpush3.bf16.msra.mxu1 %v463_v9  ;;  %2472 = vmatmul.mubr.msk.bf16.vlgmr.msra.gmra.mrb[0].mxu0 %vm272_vm1, %v2776_v11  ;;  %v2780_v17 = vld [vmem:[%s3076_s21 + $0x18] sm:$0xff]   ;;  %v2782_v19 = vld [vmem:[%s3101_s6] sm:$0xff]   ;;  %v2784_v21 = vld [vmem:[%s3101_s6 + $0x8] sm:$0xff]   ;;  %s2232_s4 = sshll.u32 %s1372_s27, 2  ;;  %s588_s10 = sshra.s32 %s2297_s5, 3 }
  0x22   : > { %2488 = vmatpush3.bf16.msra.mxu0 %v1231_v12  ;;  %2403 = vmatprep.mubr.msk.bf16.mxu1 %vm272_vm1, %v2777_v14  ;;  %v2785_v22 = vld [vmem:[%s3073_s20 + $0x30] sm:$0xff]   ;;  %v2787_v26 = vld [vmem:[%s3073_s20 + $0x38] sm:$0xff]   ;;  %s3134_s7 = scalar_lea.vmem %s3070_s9, %s2232_s4  ;;  %v2789_v28 = vld [vmem:[%s3115_s11] sm:$0xff]   ;;  %s2156_s24 = sshll.u32 %s588_s10, 2 }
  0x23   : > { %2475 = vmatprep.mubr.msk.bf16.mxu0 %vm272_vm1, %v2778_v15  ;;  %2696 = vmatprep.subr.msk.bf16.mxu0 %vm297_vm0, %v2233_v10  ;;  %v2786_v23 = vld [vmem:[%s3101_s6 + $0x10] sm:$0xff]   ;;  %v2788_v27 = vld [vmem:[%s3101_s6 + $0x18] sm:$0xff]   ;;  %v2790_v29 = vld [vmem:[%s3101_s6 + $0x20] sm:$0xff]   ;;  %s3144_s20 = scalar_lea.vmem %s3070_s9, %s2156_s24  ;;  %s2303_s27 = sadd.s32 96, %s3053_s8 }
  0x24   : > { %2691 = vmatprep.subr.msk.bf16.mxu1 %vm297_vm0, %v2157_v13  ;;  %v2791_v30 = vld [vmem:[%s3115_s11 + $0x8] sm:$0xff]   ;;  %v2793_v33 = vld [vmem:[%s3115_s11 + $0x10] sm:$0xff]   ;;  %s1348_s28 = sshra.s32 %s2303_s27, 3  ;;  %s2295_s10 = sadd.s32 32, %s3053_s8  ;;  %v2795_v36 = vld [vmem:[%s3115_s11 + $0x18] sm:$0xff]  }
  0x25   : > { %v2792_v31 = vld [vmem:[%s3101_s6 + $0x28] sm:$0xff]   ;;  %v2794_v34 = vld [vmem:[%s3101_s6 + $0x30] sm:$0xff]   ;;  %s2229_s5 = sshll.u32 %s1348_s28, 2  ;;  %v2796_v37 = vld [vmem:[%s3101_s6 + $0x38] sm:$0xff]   ;;  %s564_s27 = sshra.s32 %s2295_s10, 3 }
  0x26   : > { %s3163_s24 = scalar_lea.vmem %s3070_s9, %s2229_s5  ;;  %v2797_v38 = vld [vmem:[%s3115_s11 + $0x20] sm:$0xff]   ;;  %s2153_s28 = sshll.u32 %s564_s27, 2  ;;  %v2799_v40 = vld [vmem:[%s3115_s11 + $0x28] sm:$0xff]   ;;  %v2801_v42 = vld [vmem:[%s3115_s11 + $0x30] sm:$0xff]  }
  0x27   : > { %v2798_v39 = vld [vmem:[%s3134_s7] sm:$0xff]   ;;  %s3173_s29 = scalar_lea.vmem %s3070_s9, %s2153_s28  ;;  %s2307_s6 = sadd.s32 128, %s3053_s8  ;;  %v2800_v41 = vld [vmem:[%s3134_s7 + $0x8] sm:$0xff]   ;;  %v2802_v43 = vld [vmem:[%s3134_s7 + $0x10] sm:$0xff]  }
  0x28   : > { %2404 = vmatmul.mubr.msk.bf16.gmra.mrb[4].mxu1 %vm272_vm1, %v2779_v16  ;;  %s1740_s4 = sshra.s32 %s2307_s6, 3  ;;  %v2803_v46 = vld [vmem:[%s3115_s11 + $0x38] sm:$0xff]   ;;  %v2805_v48 = vld [vmem:[%s3144_s20] sm:$0xff]   ;;  %v2807_v50 = vld [vmem:[%s3144_s20 + $0x8] sm:$0xff]   ;;  %s2288_s28 = sshll.u32 %s2927_s16, 5 }
  0x29   : > { %2476 = vmatmul.mubr.msk.bf16.gmra.mrb[4].mxu0 %vm272_vm1, %v2780_v17  ;;  %2407 = vmatprep.mubr.msk.bf16.mxu1 %vm272_vm1, %v2781_v18  ;;  %s2267_s8 = sshll.u32 %s1740_s4, 2  ;;  %v2804_v47 = vld [vmem:[%s3134_s7 + $0x18] sm:$0xff]   ;;  %v2806_v49 = vld [vmem:[%s3134_s7 + $0x20] sm:$0xff]   ;;  %v2808_v51 = vld [vmem:[%s3134_s7 + $0x28] sm:$0xff]  }
  0x2a   : > { %2489 = vmatprep.mubr.msk.bf16.mxu0 %vm272_vm1, %v2782_v19  ;;  %s3191_s27 = scalar_lea.vmem %s3070_s9, %s2267_s8  ;;  %v2809_v52 = vld [vmem:[%s3144_s20 + $0x10] sm:$0xff]   ;;  %v2811_v55 = vld [vmem:[%s3144_s20 + $0x18] sm:$0xff]   ;;  %v2813_v57 = vld [vmem:[%s3144_s20 + $0x20] sm:$0xff]   ;;  %s175_s9 = sand.u32 1, %s2915_s13  }
  0x2b   : > { %v2810_v54 = vld [vmem:[%s3134_s7 + $0x30] sm:$0xff]   ;;  %v2812_v56 = vld [vmem:[%s3134_s7 + $0x38] sm:$0xff]   ;;  %v2814_v58 = vld [vmem:[%s3163_s24] sm:$0xff]   ;;  %s3334_s10 = scalar_lea.sflag [#allocation3], %s175_s9 }
  0x2c   : > { %v2815_v59 = vld [vmem:[%s3144_s20 + $0x28] sm:$0xff]   ;;  %v2817_v61 = vld [vmem:[%s3144_s20 + $0x30] sm:$0xff]   ;;  %v2819_v0 = vld [vmem:[%s3144_s20 + $0x38] sm:$0xff]  }
  0x2d   : > { %v2816_v60 = vld [vmem:[%s3163_s24 + $0x8] sm:$0xff]   ;;  %v2818_v62 = vld [vmem:[%s3163_s24 + $0x10] sm:$0xff]   ;;  %v2821_v2 = vld [vmem:[%s3173_s29] sm:$0xff]  }
  0x2e   : > { %v2822_v4 = vld [vmem:[%s3163_s24 + $0x20] sm:$0xff]   ;;  %v2823_v5 = vld [vmem:[%s3173_s29 + $0x8] sm:$0xff]   ;;  %v2825_v7 = vld [vmem:[%s3173_s29 + $0x10] sm:$0xff]  }
  0x2f   : > { %v2824_v6 = vld [vmem:[%s3163_s24 + $0x28] sm:$0xff]   ;;  %v2826_v8 = vld [vmem:[%s3163_s24 + $0x30] sm:$0xff]   ;;  %v2827_v9 = vld [vmem:[%s3173_s29 + $0x18] sm:$0xff]  }
  0x30   : > { %2408 = vmatmul.mubr.msk.bf16.gmra.mrb[8].mxu1 %vm272_vm1, %v2783_v20  ;;  %v2828_v10 = vld [vmem:[%s3163_s24 + $0x38] sm:$0xff]   ;;  %v2829_v11 = vld [vmem:[%s3173_s29 + $0x20] sm:$0xff]   ;;  %v2832_v13 = vld [vmem:[%s3191_s27 + $0x8] sm:$0xff]  }
  0x31   : > { %2490 = vmatmul.mubr.msk.bf16.vlgmr.msra.gmra.mrb[0].mxu0 %vm272_vm1, %v2784_v21  ;;  %2411 = vmatprep.mubr.msk.bf16.mxu1 %vm272_vm1, %v2785_v22  ;;  %v2830_v12 = vld [vmem:[%s3191_s27] sm:$0xff]   ;;  %v2833_v14 = vld [vmem:[%s3173_s29 + $0x30] sm:$0xff]   ;;  %v2835_v16 = vld [vmem:[%s3173_s29 + $0x38] sm:$0xff]  }
  0x32   : > { %2506 = vmatpush3.bf16.msra.mxu0 %v1459_v24  ;;  %2493 = vmatprep.mubr.msk.bf16.mxu0 %vm272_vm1, %v2786_v23  ;;  %v2834_v15 = vld [vmem:[%s3191_s27 + $0x10] sm:$0xff]   ;;  %v2836_v17 = vld [vmem:[%s3191_s27 + $0x18] sm:$0xff]   ;;  %v2837_v18 = vld [vmem:[%s3076_s21 + $0x20] sm:$0xff]  }
  0x33   : > { %2697 = vmatprep.subr.msk.bf16.mxu0 %vm297_vm0, %v2230_v25  ;;  %v2838_v19 = vld [vmem:[%s3191_s27 + $0x20] sm:$0xff]   ;;  %v2839_v20 = vld [vmem:[%s3076_s21 + $0x28] sm:$0xff]   ;;  %v2841_v22 = vld [vmem:[%s3076_s21 + $0x30] sm:$0xff]  }
  0x34   : > { %v2840_v21 = vld [vmem:[%s3191_s27 + $0x28] sm:$0xff]   ;;  %v2842_v23 = vld [vmem:[%s3191_s27 + $0x30] sm:$0xff]   ;;  %v2843_v24 = vld [vmem:[%s3076_s21 + $0x38] sm:$0xff]   ;;  %s2112_s21 = sshll.u32 %s175_s9, 7 }
  0x35   : > { %v2844_v25 = vld [vmem:[%s3191_s27 + $0x38] sm:$0xff]   ;;  %s3292_s20 = scalar_lea.vmem [#allocation2], %s2112_s21  ;;  %s2941_s27 = smov [#allocation2]  }
  0x36   : > { %s2013_s16 = sshll.u32 %s3292_s20, 4  ;;  %s2849_s11 = sshll.u32 %s2941_s27, 4  ;;  %s3327_s16 = int_to_ptr.vmem [resolvable:$true] %s2013_s16  ;;  %s2850_s11 = int_to_ptr.vmem [resolvable:$false] %s2849_s11 }
  0x37   : > { %s2845_s8 = scalar_lea.vmem %s3327_s16, 2048  ;;  %s2851_s7 = scalar_lea.vmem %s2850_s11, 4096 }
  0x38   : > { %2412 = vmatmul.mubr.msk.bf16.gmra.mrb[12].mxu1 %vm272_vm1, %v2787_v26  ;;  %p2846_p13 = scmp.ne.s32.totalorder %s3327_s16, %s2845_s8  ;;  %p2852_p2 = scmp.lt.s32.totalorder %s3327_s16, %s2850_s11 }
  0x39   : > { %2494 = vmatmul.mubr.msk.bf16.gmra.mrb[4].mxu0 %vm272_vm1, %v2788_v27  ;;  %2417 = vmatprep.mubr.msk.bf16.mxu1 %vm272_vm1, %v2789_v28  ;;  %p2853_p4 = scmp.lt.s32.totalorder %s2851_s7, %s2845_s8 }
  0x3a   : > { %2497 = vmatprep.mubr.msk.bf16.mxu0 %vm272_vm1, %v2790_v29  ;;  %p2847_p0 = pnand %p2846_p13, %p3015_p3 }
  0x3b   : > { %p2854_p5 = por %p2853_p4, %p2852_p2 }
  0x3c   : > { %p2848_p1 = pneg %p2847_p0 }
  0x3e   : > { %p2855_p6 = pnand %p2854_p5, %p2848_p1 }
  0x40   : > { %2418 = vmatmul.mubr.msk.bf16.vlgmr.msra.gmra.mrb[0].mxu1 %vm272_vm1, %v2791_v30 }
  0x41   : > { %2434 = vmatpush3.bf16.msra.mxu1 %v675_v32  ;;  %2498 = vmatmul.mubr.msk.bf16.gmra.mrb[8].mxu0 %vm272_vm1, %v2792_v31 }
  0x42   : > { %2421 = vmatprep.mubr.msk.bf16.mxu1 %vm272_vm1, %v2793_v33  ;;  %2501 = vmatprep.mubr.msk.bf16.mxu0 %vm272_vm1, %v2794_v34 }
  0x43   : > { %2692 = vmatprep.subr.msk.bf16.mxu1 %vm297_vm0, %v2154_v35  ;;  %v3284_v35 = vld [vmem:[%s3388_s2] ss:$0 sm:$0xff] }
  0x48   : > { %2422 = vmatmul.mubr.msk.bf16.gmra.mrb[4].mxu1 %vm272_vm1, %v2795_v36 }
  0x49   : > { %2502 = vmatmul.mubr.msk.bf16.gmra.mrb[12].mxu0 %vm272_vm1, %v2796_v37  ;;  %2425 = vmatprep.mubr.msk.bf16.mxu1 %vm272_vm1, %v2797_v38 }
  0x4a   : > { %2507 = vmatprep.mubr.msk.bf16.mxu0 %vm272_vm1, %v2798_v39 }
  0x50   : > { %2426 = vmatmul.mubr.msk.bf16.gmra.mrb[8].mxu1 %vm272_vm1, %v2799_v40 }
  0x51   : > { %2508 = vmatmul.mubr.msk.bf16.vlgmr.msra.gmra.mrb[0].mxu0 %vm272_vm1, %v2800_v41  ;;  %2429 = vmatprep.mubr.msk.bf16.mxu1 %vm272_vm1, %v2801_v42 }
  0x52   : > { %2524 = vmatpush3.bf16.msra.mxu0 %v1623_v44  ;;  %2511 = vmatprep.mubr.msk.bf16.mxu0 %vm272_vm1, %v2802_v43 }
  0x53   : > { %2698 = vmatprep.subr.msk.bf16.mxu0 %vm297_vm0, %v2268_v45 }
  0x58   : > { %2430 = vmatmul.mubr.msk.bf16.gmra.mrb[12].mxu1 %vm272_vm1, %v2803_v46 }
  0x59   : > { %2512 = vmatmul.mubr.msk.bf16.gmra.mrb[4].mxu0 %vm272_vm1, %v2804_v47  ;;  %2435 = vmatprep.mubr.msk.bf16.mxu1 %vm272_vm1, %v2805_v48 }
  0x5a   : > { %2515 = vmatprep.mubr.msk.bf16.mxu0 %vm272_vm1, %v2806_v49 }
  0x60   : > { %2436 = vmatmul.mubr.msk.bf16.vlgmr.msra.gmra.mrb[0].mxu1 %vm272_vm1, %v2807_v50 }
  0x61   : > { %2452 = vmatpush3.bf16.msra.mxu1 %v839_v53  ;;  %2516 = vmatmul.mubr.msk.bf16.gmra.mrb[8].mxu0 %vm272_vm1, %v2808_v51 }
  0x62   : > { %2439 = vmatprep.mubr.msk.bf16.mxu1 %vm272_vm1, %v2809_v52  ;;  %2519 = vmatprep.mubr.msk.bf16.mxu0 %vm272_vm1, %v2810_v54 }
  0x63   : > { %2694 = vmatprep.subr.msk.bf16.mxu1 %vm297_vm0, %v3041_v1  ;;  %v2820_v1 = vld [vmem:[%s3163_s24 + $0x18] sm:$0xff]   ;;  %s2287_s24 = sshll.u32 %s2923_s15, 4 }
  0x68   : > { %2440 = vmatmul.mubr.msk.bf16.gmra.mrb[4].mxu1 %vm272_vm1, %v2811_v55 }
  0x69   : > { %2520 = vmatmul.mubr.msk.bf16.gmra.mrb[12].mxu0 %vm272_vm1, %v2812_v56  ;;  %2443 = vmatprep.mubr.msk.bf16.mxu1 %vm272_vm1, %v2813_v57 }
  0x6a   : > { %2525 = vmatprep.mubr.msk.bf16.mxu0 %vm272_vm1, %v2814_v58 }
  0x70   : > { %2444 = vmatmul.mubr.msk.bf16.gmra.mrb[8].mxu1 %vm272_vm1, %v2815_v59 }
  0x71   : > { %2526 = vmatmul.mubr.msk.bf16.vlgmr.msra.gmra.mrb[0].mxu0 %vm272_vm1, %v2816_v60  ;;  %2447 = vmatprep.mubr.msk.bf16.mxu1 %vm272_vm1, %v2817_v61 }
  0x72   : > { %2542 = vmatpush3.bf16.msra.mxu0 %v1827_v63  ;;  %2529 = vmatprep.mubr.msk.bf16.mxu0 %vm272_vm1, %v2818_v62 }
  0x78   : > { %2448 = vmatmul.mubr.msk.bf16.gmra.mrb[12].mxu1 %vm272_vm1, %v2819_v0 }
  0x79   : > { %2530 = vmatmul.mubr.msk.bf16.gmra.mrb[4].mxu0 %vm272_vm1, %v2820_v1  ;;  %2453 = vmatprep.mubr.msk.bf16.mxu1 %vm272_vm1, %v2821_v2 }
  0x7a   : > { %2533 = vmatprep.mubr.msk.bf16.mxu0 %vm272_vm1, %v2822_v4 }
  0x80   : > { %2454 = vmatmul.mubr.msk.bf16.vlgmr.msra.gmra.mrb[0].mxu1 %vm272_vm1, %v2823_v5 }
  0x81   : > { %2560 = vmatpush3.bf16.msra.mxu1 %v3050_v3  ;;  %2534 = vmatmul.mubr.msk.bf16.gmra.mrb[8].mxu0 %vm272_vm1, %v2824_v6  ;;  %v2831_v3 = vld [vmem:[%s3173_s29 + $0x28] sm:$0xff]   ;;  %s2010_s29 = sadd.s32 %s2288_s28, %s2287_s24 }
  0x82   : > { %2457 = vmatprep.mubr.msk.bf16.mxu1 %vm272_vm1, %v2825_v7  ;;  %2537 = vmatprep.mubr.msk.bf16.mxu0 %vm272_vm1, %v2826_v8  ;;  %s2289_s15 = sshll.u32 %s2010_s29, 7 }
  0x83   : > { %s3325_s5 = scalar_lea.hbm %s3389_s3, %s2289_s15 }
  0x88   : > { %2458 = vmatmul.mubr.msk.bf16.gmra.mrb[4].mxu1 %vm272_vm1, %v2827_v9 }
  0x89   : > { %2538 = vmatmul.mubr.msk.bf16.gmra.mrb[12].mxu0 %vm272_vm1, %v2828_v10  ;;  %2461 = vmatprep.mubr.msk.bf16.mxu1 %vm272_vm1, %v2829_v11 }
  0x8a   : > { %2543 = vmatprep.mubr.msk.bf16.mxu0 %vm272_vm1, %v2830_v12 }
  0x90   : > { %2462 = vmatmul.mubr.msk.bf16.gmra.mrb[8].mxu1 %vm272_vm1, %v2831_v3 }
  0x91   : > { %2544 = vmatmul.mubr.msk.bf16.vlgmr.msra.gmra.mrb[0].mxu0 %vm272_vm1, %v2832_v13  ;;  %2465 = vmatprep.mubr.msk.bf16.mxu1 %vm272_vm1, %v2833_v14 }
  0x92   : > { %2547 = vmatprep.mubr.msk.bf16.mxu0 %vm272_vm1, %v2834_v15 }
  0x98   : > { %2466 = vmatmul.mubr.msk.bf16.gmra.mrb[12].mxu1 %vm272_vm1, %v2835_v16 }
  0x99   : > { %2548 = vmatmul.mubr.msk.bf16.gmra.mrb[4].mxu0 %vm272_vm1, %v2836_v17  ;;  %2479 = vmatprep.mubr.msk.bf16.mxu1 %vm272_vm1, %v2837_v18 }
  0x9a   : > { %2551 = vmatprep.mubr.msk.bf16.mxu0 %vm272_vm1, %v2838_v19 }
  0xa0   : > { %2480 = vmatmul.mubr.msk.bf16.vlgmr.msra.gmra.mrb[8].mxu1 %vm272_vm1, %v2839_v20 }
  0xa1   : > { %2552 = vmatmul.mubr.msk.bf16.gmra.mrb[8].mxu0 %vm272_vm1, %v2840_v21  ;;  %2483 = vmatprep.mubr.msk.bf16.mxu1 %vm272_vm1, %v2841_v22 }
  0xa2   : > { %2555 = vmatprep.mubr.msk.bf16.mxu0 %vm272_vm1, %v2842_v23 }
  0xa8   : > { %2484 = vmatmul.mubr.msk.bf16.gmra.mrb[12].mxu1 %vm272_vm1, %v2843_v24 }
  0xa9   : > { %2556 = vmatmul.mubr.msk.bf16.gmra.mrb[12].mxu0 %vm272_vm1, %v2844_v25 }
 0x153   : > { %v2455_v26 = vpop.f32.mrb[0].mxu1 }
 0x154   : > { %v875_v27 = vpop.f32.mrb[1].mxu1 }
 0x155   : > { %v2456_v28 = vpop.f32.mrb[2].mxu1 }
 0x156   : > { %v878_v29 = vpop.f32.mrb[3].mxu1 }
 0x15b   : > { %v2459_v30 = vpop.f32.mrb[4].mxu1 }
 0x15c   : > { %v891_v31 = vpop.f32.mrb[5].mxu1 }
 0x15d   : > { %v2460_v32 = vpop.f32.mrb[6].mxu1 }
 0x15e   : > { %v894_v33 = vpop.f32.mrb[7].mxu1 }
 0x164   : > { %v2545_v34 = vpop.f32.mrb[0].mxu0 }
 0x165   : > { %v2561_v36 = vadd.f32 %v2545_v34, %v2455_v26  ;;  %v1863_v37 = vpop.f32.mrb[1].mxu0 }
 0x166   : > { %v2562_v38 = vadd.f32 %v1863_v37, %v875_v27  ;;  %v2546_v39 = vpop.f32.mrb[2].mxu0 }
 0x167   : > { %v1951_v40 = vadd.f32 %v2561_v36, %v3284_v35  ;;  %v2563_v41 = vadd.f32 %v2546_v39, %v2456_v28  ;;  %v1866_v42 = vpop.f32.mrb[3].mxu0 }
 0x168   : > { %v1949_v43 = vadd.f32 %v2562_v38, %v3284_v35  ;;  %v2564_v44 = vadd.f32 %v1866_v42, %v878_v29 }
 0x169   : > { %v1967_v45 = vmax.f32 %v1951_v40, 0.0  ;;  %v1952_v46 = vadd.f32 %v2563_v41, %v3284_v35 }
 0x16a   : > { %v1965_v47 = vmax.f32 %v1949_v43, 0.0  ;;  %v1950_v48 = vadd.f32 %v2564_v44, %v3284_v35 }
 0x16b   : > { %1983 = vst [vmem:[%s3292_s20 + $0x10] sm:$0xff] %v1967_v45  ;;  %v1968_v49 = vmax.f32 %v1952_v46, 0.0 }
 0x16c   : > { %1981 = vst [vmem:[%s3292_s20] sm:$0xff] %v1965_v47  ;;  %v1966_v50 = vmax.f32 %v1950_v48, 0.0  ;;  %v2549_v51 = vpop.f32.mrb[4].mxu0 }
 0x16d   : > { %1984 = vst [vmem:[%s3292_s20 + $0x18] sm:$0xff] %v1968_v49  ;;  %v2565_v52 = vadd.f32 %v2549_v51, %v2459_v30  ;;  %v1879_v53 = vpop.f32.mrb[5].mxu0 }
 0x16e   : > { %1982 = vst [vmem:[%s3292_s20 + $0x8] sm:$0xff] %v1966_v50  ;;  %v2566_v54 = vadd.f32 %v1879_v53, %v891_v31  ;;  %v2550_v55 = vpop.f32.mrb[6].mxu0 }
 0x16f   : > { %v1955_v56 = vadd.f32 %v2565_v52, %v3284_v35  ;;  %v2567_v57 = vadd.f32 %v2550_v55, %v2460_v32  ;;  %v1882_v58 = vpop.f32.mrb[7].mxu0 }
 0x170   : > { %v1953_v59 = vadd.f32 %v2566_v54, %v3284_v35  ;;  %v2568_v60 = vadd.f32 %v1882_v58, %v894_v33 }
 0x171   : > { %v1971_v61 = vmax.f32 %v1955_v56, 0.0  ;;  %v1956_v62 = vadd.f32 %v2567_v57, %v3284_v35 }
 0x172   : > { %v1969_v63 = vmax.f32 %v1953_v59, 0.0  ;;  %v1954_v0 = vadd.f32 %v2568_v60, %v3284_v35 }
 0x173   : > { %1987 = vst [vmem:[%s3292_s20 + $0x30] sm:$0xff] %v1971_v61  ;;  %v1972_v1 = vmax.f32 %v1956_v62, 0.0  ;;  %v2481_v2 = vpop.f32.mrb[8].mxu1 }
 0x174   : > { %1985 = vst [vmem:[%s3292_s20 + $0x20] sm:$0xff] %v1969_v63  ;;  %v1970_v4 = vmax.f32 %v1954_v0, 0.0  ;;  %v2553_v5 = vpop.f32.mrb[8].mxu0  ;;  %v1135_v6 = vpop.f32.mrb[9].mxu1 }
 0x175   : > { %1988 = vst [vmem:[%s3292_s20 + $0x38] sm:$0xff] %v1972_v1  ;;  %v2569_v7 = vadd.f32 %v2553_v5, %v2481_v2  ;;  %v1895_v8 = vpop.f32.mrb[9].mxu0  ;;  %v2482_v9 = vpop.f32.mrb[10].mxu1 }
 0x176   : > { %1986 = vst [vmem:[%s3292_s20 + $0x28] sm:$0xff] %v1970_v4  ;;  %v2570_v10 = vadd.f32 %v1895_v8, %v1135_v6  ;;  %v2554_v11 = vpop.f32.mrb[10].mxu0  ;;  %v1138_v12 = vpop.f32.mrb[11].mxu1 }
 0x177   : > { %v1959_v3 = vadd.f32 %v2569_v7, %v3284_v35  ;;  %v2571_v13 = vadd.f32 %v2554_v11, %v2482_v9  ;;  %v1898_v14 = vpop.f32.mrb[11].mxu0 }
 0x178   : > { %v1957_v15 = vadd.f32 %v2570_v10, %v3284_v35  ;;  %v2572_v16 = vadd.f32 %v1898_v14, %v1138_v12 }
 0x179   : > { %v1975_v17 = vmax.f32 %v1959_v3, 0.0  ;;  %v1960_v18 = vadd.f32 %v2571_v13, %v3284_v35 }
 0x17a   : > { %v1973_v19 = vmax.f32 %v1957_v15, 0.0  ;;  %v1958_v20 = vadd.f32 %v2572_v16, %v3284_v35 }
 0x17b   : > { %1991 = vst [vmem:[%s3292_s20 + $0x50] sm:$0xff] %v1975_v17  ;;  %v1976_v21 = vmax.f32 %v1960_v18, 0.0  ;;  %v2485_v22 = vpop.f32.mrb[12].mxu1 }
 0x17c   : > { %1989 = vst [vmem:[%s3292_s20 + $0x40] sm:$0xff] %v1973_v19  ;;  %v1974_v23 = vmax.f32 %v1958_v20, 0.0  ;;  %v2557_v24 = vpop.f32.mrb[12].mxu0  ;;  %v1151_v25 = vpop.f32.mrb[13].mxu1 }
 0x17d   : > { %1992 = vst [vmem:[%s3292_s20 + $0x58] sm:$0xff] %v1976_v21  ;;  %v2573_v26 = vadd.f32 %v2557_v24, %v2485_v22  ;;  %v1911_v27 = vpop.f32.mrb[13].mxu0  ;;  %v2486_v28 = vpop.f32.mrb[14].mxu1 }
 0x17e   : > { %1990 = vst [vmem:[%s3292_s20 + $0x48] sm:$0xff] %v1974_v23  ;;  %v2574_v29 = vadd.f32 %v1911_v27, %v1151_v25  ;;  %v2558_v30 = vpop.f32.mrb[14].mxu0  ;;  %v1154_v31 = vpop.f32.mrb[15].mxu1 }
 0x17f   : > { %v1963_v32 = vadd.f32 %v2573_v26, %v3284_v35  ;;  %v2575_v33 = vadd.f32 %v2558_v30, %v2486_v28  ;;  %v1914_v34 = vpop.f32.mrb[15].mxu0 }
 0x180   : > { %v1961_v36 = vadd.f32 %v2574_v29, %v3284_v35  ;;  %v2576_v37 = vadd.f32 %v1914_v34, %v1154_v31 }
 0x181   : > { %v1979_v38 = vmax.f32 %v1963_v32, 0.0  ;;  %v1964_v39 = vadd.f32 %v2575_v33, %v3284_v35 }
 0x182   : > { %v1977_v40 = vmax.f32 %v1961_v36, 0.0  ;;  %v1962_v41 = vadd.f32 %v2576_v37, %v3284_v35 }
 0x183   : > { %1995 = vst [vmem:[%s3292_s20 + $0x70] sm:$0xff] %v1979_v38  ;;  %v1980_v42 = vmax.f32 %v1964_v39, 0.0 }
 0x184   : > { %1993 = vst [vmem:[%s3292_s20 + $0x60] sm:$0xff] %v1977_v40  ;;  %v1978_v43 = vmax.f32 %v1962_v41, 0.0 }
 0x185   : > { %1996 = vst [vmem:[%s3292_s20 + $0x78] sm:$0xff] %v1980_v42 }
 0x186   : > { %1994 = vst [vmem:[%s3292_s20 + $0x68] sm:$0xff] %v1978_v43 }
 0x187   : > { %2858 = shalt.err (!%p2855_p6)
}
 0x188   : > { %s2859_s9 = scalar_lea.hbm %s3325_s5, 2048  ;;  %s2863_s24 = scalar_lea.hbm %s3389_s3, 8192 }
 0x189   : > { %p2860_p7 = scmp.ne.s32.totalorder %s3325_s5, %s2859_s9  ;;  %p2864_p11 = scmp.lt.u32.totalorder %s3325_s5, %s3389_s3 }
 0x18a   : > { %p2865_p12 = scmp.lt.u32.totalorder %s2863_s24, %s2859_s9  ;;  %p2867_p0 = scmp.lt.u32.totalorder %s2859_s9, %s3325_s5 }
 0x18b   : > { %p2861_p9 = pnand %p2860_p7, %p3015_p3 }
 0x18c   : > { %p2866_p13 = por %p2865_p12, %p2864_p11 }
 0x18d   : > { %p2862_p10 = pneg %p2861_p9 }
 0x18e   : > { %p2868_p1 = por %p2867_p0, %p2866_p13 }
 0x190   : > { %p2869_p2 = pnand %p2868_p1, %p2862_p10 }
 0x192   : > { %2872 = shalt.err (!%p2869_p2)
}
 0x193   : > { %s2942_s15 = smov 128   ;;  %s2943_s6 = smov 8  }
 0x194   : > { %2700 = dma.vmem_to_hbm [thread:$0]  (%p3015_p3), %s3327_s16, 2048, %s3325_s5, %s3334_s10, %s2942_s15, %s2942_s15, %s2943_s6  }
 0x195 PF: > { %p2706_p4 = scmp.ge.s32.totalorder %s2939_s19, 2  ;;  %s2028_s4 = sand.u32 1, %s2911_s12  }
 0x196   : > { %s2029_s8 = scalar_lea.sflag [#allocation3], %s2028_s4 }
 0x197   : > { %p2703_p5 = pnand %p2706_p4, %p3024_p8 }
 0x199   : > { %2906 = dma.done.wait (!%p2703_p5), %s2029_s8, 2048  }
 0x19a   : > { %2908 = vsyncadd (!%p2703_p5), %s2029_s8, 4294965248  ;;  %s16_s19 = sadd.s32 1, %s2939_s19   ;;  %s3392_s12 = smov %s2915_s13 }
 0x19b   : > { %p13_p6 = scmp.ge.s32.totalorder %s16_s19, 6   ;;  %s3393_s13 = smov %s2919_s14 }
 0x19c   : > { %s3394_s14 = smov %s3033_s30  ;;  %s3395_s15 = smov %s2931_s17 }
 0x19d   : > { %s3396_s16 = smov %s2935_s18  ;;  %s3397_s17 = smov %s3400_s22 }
 0x19e   : > { %s3398_s18 = smov %s3404_s23  ;;  %15 = sbr.rel (!%p13_p6) target bundleno = 5 (0x5), region = 84 }
 0x1a5   :  { %2034 = vsyncpa [#allocation3], 1 }
 0x1a6   :  { %2036 = vsyncpa [#allocation3 + $0x1], 1 }

</bundles_post_ra>
